<compile_context>
chip_gen: v5e
topology: v5e:2x2
jax: 0.10.0
libtpu: 0.0.40
codegen_flags: <defaults>
</compile_context>

<pallas_src>
import functools

import jax
import jax.numpy as jnp
import numpy as np
from jax.experimental import pallas as pl
from jax.experimental.pallas import tpu as pltpu


# ---------------------------------------------------------------------------
# activation (static name chosen at trace time, matches nn.LeakyReLU/ReLU/ELU)
# ---------------------------------------------------------------------------
def _apply_act(name, x):
    if name == "relu":
        return jnp.maximum(x, 0.0)
    elif name == "leakyrelu":
        return jnp.where(x >= 0, x, 0.01 * x)          # nn.LeakyReLU default slope
    elif name == "elu":
        return jnp.where(x >= 0, x, jnp.expm1(jnp.minimum(x, 0.0)))
    else:
        raise ValueError(name)


# ---------------------------------------------------------------------------
# single fused Pallas kernel: linear_in -> L x (RGCNConv + act) -> head
# ---------------------------------------------------------------------------
def _rgcn_fused_kernel(x_ref, adj_ref, w_in_ref, b_in_ref,
                       wrelcat_ref, bconv_ref,
                       wpool_ref, bpool_ref, wout_ref, bout_ref,
                       o_ref, xw_stack, *, act_name, n_layers, n_rel):
    n = x_ref.shape[0]
    hdim = w_in_ref.shape[1]

    # linear_in: bf16 MXU inputs, f32 accumulation
    h = (jnp.dot(x_ref[...].astype(jnp.bfloat16), w_in_ref[...],
                 preferred_element_type=jnp.float32) + b_in_ref[...])
    # TODO(synk): nn.Dropout is stochastic during training; identity at eval.

    for l in range(n_layers):                       # static, unrolled
        h_bf = h.astype(jnp.bfloat16)

        # all R relation transforms AND the root transform in ONE
        # (N,H)@(H,(R+1)*H) matmul (W_root is the last H-column block)
        xw = jnp.dot(h_bf, wrelcat_ref[l], preferred_element_type=jnp.float32)
        xw_bf = xw.astype(jnp.bfloat16)

        # restack (N,(R+1)*H) -> ((R+1)*N, H): write each lane-tile-aligned
        # relation block straight into the preallocated VMEM scratch
        for r in range(n_rel + 1):
            xw_stack[r * n:(r + 1) * n, :] = xw_bf[:, r * hdim:(r + 1) * hdim]

        # relation-summed mean aggregation + root/self term in ONE deep-K
        # (K = (R+1)*N) matmul against the augmented lane-dense adjacency
        # adj_aug[i, r*N+j] = adj[r,i,j]  (r < R),  adj_aug[i, R*N+j] = [i==j]
        msg = jnp.dot(adj_ref[...], xw_stack[...],
                      preferred_element_type=jnp.float32)
        h = _apply_act(act_name, msg + bconv_ref[l])

    # head: linear_pool -> act -> (dropout = identity) -> linear_out (lane-padded)
    h_bf = h.astype(jnp.bfloat16)
    p = (jnp.dot(h_bf, wpool_ref[...], preferred_element_type=jnp.float32)
         + bpool_ref[...])
    p = _apply_act(act_name, p)
    o_ref[...] = (jnp.dot(p.astype(jnp.bfloat16), wout_ref[...],
                          preferred_element_type=jnp.float32) + bout_ref[...])


# ---------------------------------------------------------------------------
# one-time weight preparation (done at model init, NOT per forward call)
# ---------------------------------------------------------------------------
_VMEM = pl.BlockSpec(memory_space=pltpu.MemorySpace.VMEM)
_OUT_LANES = 128     # lane-dense padded width for linear_out


def prepare_params(params, *, n_rel):
    bf16, f32 = jnp.bfloat16, jnp.float32
    h = params["w_in"].shape[1]
    dout = params["w_out"].shape[1]

    # wrelcat_aug[l][h_in, r*H + h_out] = W_rel[l][r]  for r < R,
    # last H-column block = W_root[l]   -> shape (L, H, (R+1)*H)
    wrelcat_aug = jnp.stack([
        jnp.concatenate(
            [jnp.transpose(wr, (1, 0, 2)).reshape(h, n_rel * h), wroot], axis=1)
        for (wr, wroot, _) in params["convs"]]).astype(bf16)
    bconv = jnp.stack([b for (_, _, b) in params["convs"]]).astype(f32)  # (L,1,H)

    # zero-pad linear_out to 128 lanes for a lane-dense final store
    w_out = jnp.pad(params["w_out"], ((0, 0), (0, _OUT_LANES - dout))).astype(bf16)
    b_out = jnp.pad(params["b_out"], ((0, 0), (0, _OUT_LANES - dout))).astype(f32)

    return dict(
        w_in=params["w_in"].astype(bf16), b_in=params["b_in"].astype(f32),
        wrelcat_aug=wrelcat_aug, bconv=bconv,
        w_pool=params["w_pool"].astype(bf16), b_pool=params["b_pool"].astype(f32),
        w_out=w_out, b_out=b_out, d_out=dout)


# ---------------------------------------------------------------------------
# per-call wrapper around pallas_call (no weight glue here)
# ---------------------------------------------------------------------------
def rgcn_forward(prep, x, adj_wide_aug, *, n_layers, n_rel, act_name):
    n = x.shape[0]
    hdim = prep["w_in"].shape[1]

    out_padded = pl.pallas_call(
        functools.partial(_rgcn_fused_kernel, act_name=act_name,
                          n_layers=n_layers, n_rel=n_rel),
        out_shape=jax.ShapeDtypeStruct((n, _OUT_LANES), jnp.float32),
        in_specs=[_VMEM] * 10,
        out_specs=_VMEM,
        scratch_shapes=[pltpu.VMEM(((n_rel + 1) * n, hdim), jnp.bfloat16)],
    )(x, adj_wide_aug,
      prep["w_in"], prep["b_in"], prep["wrelcat_aug"], prep["bconv"],
      prep["w_pool"], prep["b_pool"], prep["w_out"], prep["b_out"])
    return out_padded[:, :prep["d_out"]]


# ---------------------------------------------------------------------------
# glue: normalized adjacency built DIRECTLY in the augmented wide layout
#   adj_aug[i, r*N + j] = (1/deg_r(i)) * [edge (j -r-> i)]   for r < R
#   adj_aug[i, R*N + j] = [i == j]                            (root/self block)
# ---------------------------------------------------------------------------
def build_norm_adj_wide(edge_index, edge_type, n_nodes, n_relations):
    src, dst = edge_index[0], edge_index[1]                 # messages flow src -> dst
    a = jnp.zeros((n_nodes, n_relations, n_nodes), jnp.float32)
    a = a.at[dst, edge_type, src].add(1.0)
    deg = a.sum(axis=-1, keepdims=True)
    a = a / jnp.maximum(deg, 1.0)                           # mean aggregation
    a_wide = a.reshape(n_nodes, n_relations * n_nodes)      # contiguous reshape
    eye = jnp.eye(n_nodes, dtype=jnp.float32)
    return jnp.concatenate([a_wide, eye], axis=1).astype(jnp.bfloat16)


def build_norm_adj(edge_index, edge_type, n_nodes, n_relations):
    # dense (R, N, N) adjacency for the pure-JAX reference only
    src, dst = edge_index[0], edge_index[1]
    adj = jnp.zeros((n_relations, n_nodes, n_nodes), jnp.float32)
    adj = adj.at[edge_type, dst, src].add(1.0)
    deg = adj.sum(axis=-1, keepdims=True)
    return adj / jnp.maximum(deg, 1.0)


# ---------------------------------------------------------------------------
# pure-JAX f32 reference (matches the PyTorch module semantics)
# ---------------------------------------------------------------------------
def rgcn_reference(params, x, adj, *, n_layers, act_name, n_relations):
    h = x @ params["w_in"] + params["b_in"]
    for i in range(n_layers):
        w_rel, w_root, b = params["convs"][i]
        out = h @ w_root + b
        for r in range(n_relations):
            out = out + (adj[r] @ h) @ w_rel[r]
        h = _apply_act(act_name, out)
    h = _apply_act(act_name, h @ params["w_pool"] + params["b_pool"])
    return h @ params["w_out"] + params["b_out"]


# ---------------------------------------------------------------------------
# main
# ---------------------------------------------------------------------------
if __name__ == "__main__":
    model_config = dict(
        lm_input_dim=256,
        gnn_hidden_dim=128,
        gnn_n_layers=2,
        n_relations=4,
        dropout=0.1,
        activation="relu",
    )
    N_NODES, N_EDGES = 64, 256
    H = model_config["gnn_hidden_dim"]
    DIN = model_config["lm_input_dim"]
    R = model_config["n_relations"]
    L = model_config["gnn_n_layers"]
    ACT = model_config["activation"].lower()

    key = jax.random.PRNGKey(0)
    keys = jax.random.split(key, 16)

    # deterministic synthetic parameters (weights stored as [in, out])
    params = {
        "w_in": jax.random.normal(keys[0], (DIN, H), jnp.float32) * 0.05,
        "b_in": jax.random.normal(keys[1], (1, H), jnp.float32) * 0.05,
        "w_pool": jax.random.normal(keys[2], (H, H), jnp.float32) * 0.05,
        "b_pool": jax.random.normal(keys[3], (1, H), jnp.float32) * 0.05,
        "w_out": jax.random.normal(keys[4], (H, 2), jnp.float32) * 0.05,
        "b_out": jax.random.normal(keys[5], (1, 2), jnp.float32) * 0.05,
        "convs": [],
    }
    for i in range(L):
        ck = jax.random.split(keys[6 + i], 3)
        params["convs"].append((
            jax.random.normal(ck[0], (R, H, H), jnp.float32) * 0.05,  # W_rel
            jax.random.normal(ck[1], (H, H), jnp.float32) * 0.05,     # W_root
            jax.random.normal(ck[2], (1, H), jnp.float32) * 0.05,     # bias
        ))

    # one-time weight prep ("model init") -- hoisted out of the forward path
    prep = jax.tree.map(jax.block_until_ready,
                        prepare_params(params, n_rel=R))

    # deterministic inputs
    x = jax.random.normal(keys[10], (N_NODES, DIN), jnp.float32)
    edge_index = jax.random.randint(keys[11], (2, N_EDGES), 0, N_NODES, jnp.int32)
    edge_type = jax.random.randint(keys[12], (N_EDGES,), 0, R, jnp.int32)

    # per-call glue: edge scatter straight into the augmented wide layout
    adj_wide_aug = build_norm_adj_wide(edge_index, edge_type, N_NODES, R)

    out = rgcn_forward(prep, x, adj_wide_aug, n_layers=L, n_rel=R, act_name=ACT)
    out = jax.block_until_ready(out)

    adj_ref = build_norm_adj(edge_index, edge_type, N_NODES, R)
    ref = rgcn_reference(params, x, adj_ref, n_layers=L, act_name=ACT,
                         n_relations=R)
    np.testing.assert_allclose(np.asarray(out), np.asarray(ref), rtol=5e-2, atol=5e-2)

    assert out.shape == (N_NODES, 2)
    print("KERNEL_OK")
</pallas_src>

<mosaic_0001>
module attributes {stable_mosaic.version = 11 : i64} {
  func.func @_rgcn_fused_kernel(%arg0: memref<64x256xf32, #tpu.memory_space<vmem>>, %arg1: memref<64x320xbf16, #tpu.memory_space<vmem>>, %arg2: memref<256x128xbf16, #tpu.memory_space<vmem>>, %arg3: memref<1x128xf32, #tpu.memory_space<vmem>>, %arg4: memref<2x128x640xbf16, #tpu.memory_space<vmem>>, %arg5: memref<2x1x128xf32, #tpu.memory_space<vmem>>, %arg6: memref<128x128xbf16, #tpu.memory_space<vmem>>, %arg7: memref<1x128xf32, #tpu.memory_space<vmem>>, %arg8: memref<128x128xbf16, #tpu.memory_space<vmem>>, %arg9: memref<1x128xf32, #tpu.memory_space<vmem>>, %arg10: memref<64x128xf32, #tpu.memory_space<vmem>>, %arg11: memref<320x128xbf16, #tpu.memory_space<vmem>>) attributes {dimension_semantics = [], scalar_prefetch = 0 : i64, scratch_operands = 1 : i64, tpu.core_type = #tpu.core_type<tc>} {
    %c0 = arith.constant 0 : index
    %c0_0 = arith.constant 0 : index
    %0 = vector.load %arg0[%c0, %c0_0] : memref<64x256xf32, #tpu.memory_space<vmem>>, vector<64x256xf32>
    %1 = arith.truncf %0 : vector<64x256xf32> to vector<64x256xbf16>
    %c0_1 = arith.constant 0 : index
    %c0_2 = arith.constant 0 : index
    %2 = vector.load %arg2[%c0_1, %c0_2] : memref<256x128xbf16, #tpu.memory_space<vmem>>, vector<256x128xbf16>
    %cst = arith.constant dense<0.000000e+00> : vector<64x128xf32>
    %3 = tpu.matmul %1, %2, %cst {dimension_numbers = #tpu.dot_dimension_numbers<[1], [0], [0], [1], [0, 0, 1, 1], [], []>} : vector<64x256xbf16>, vector<256x128xbf16>, vector<64x128xf32> -> vector<64x128xf32>
    %c0_3 = arith.constant 0 : index
    %c0_4 = arith.constant 0 : index
    %4 = vector.load %arg3[%c0_3, %c0_4] : memref<1x128xf32, #tpu.memory_space<vmem>>, vector<1x128xf32>
    %5 = vector.broadcast %4 : vector<1x128xf32> to vector<64x128xf32>
    %6 = arith.addf %3, %5 : vector<64x128xf32>
    %7 = arith.truncf %6 : vector<64x128xf32> to vector<64x128xbf16>
    %c0_5 = arith.constant 0 : index
    %c0_6 = arith.constant 0 : index
    %c0_7 = arith.constant 0 : index
    %8 = vector.load %arg4[%c0_5, %c0_6, %c0_7] : memref<2x128x640xbf16, #tpu.memory_space<vmem>>, vector<1x128x640xbf16>
    %9 = vector.shape_cast %8 : vector<1x128x640xbf16> to vector<128x640xbf16>
    %cst_8 = arith.constant dense<0.000000e+00> : vector<64x640xf32>
    %10 = tpu.matmul %7, %9, %cst_8 {dimension_numbers = #tpu.dot_dimension_numbers<[1], [0], [0], [1], [0, 0, 1, 1], [], []>} : vector<64x128xbf16>, vector<128x640xbf16>, vector<64x640xf32> -> vector<64x640xf32>
    %11 = arith.truncf %10 : vector<64x640xf32> to vector<64x640xbf16>
    %12 = vector.extract_strided_slice %11 {offsets = [0, 0], sizes = [64, 128], strides = [1, 1]} : vector<64x640xbf16> to vector<64x128xbf16>
    %c0_9 = arith.constant 0 : index
    %c0_10 = arith.constant 0 : index
    %13 = vector.load %arg11[%c0_9, %c0_10] : memref<320x128xbf16, #tpu.memory_space<vmem>>, vector<64x128xbf16>
    tpu.vector_store %arg11[%c0_9, %c0_10], %12 {strides = array<i32>} : memref<320x128xbf16, #tpu.memory_space<vmem>>, vector<64x128xbf16>,
    %14 = vector.extract_strided_slice %11 {offsets = [0, 128], sizes = [64, 128], strides = [1, 1]} : vector<64x640xbf16> to vector<64x128xbf16>
    %c64 = arith.constant 64 : index
    %c0_11 = arith.constant 0 : index
    %15 = vector.load %arg11[%c64, %c0_11] : memref<320x128xbf16, #tpu.memory_space<vmem>>, vector<64x128xbf16>
    tpu.vector_store %arg11[%c64, %c0_11], %14 {strides = array<i32>} : memref<320x128xbf16, #tpu.memory_space<vmem>>, vector<64x128xbf16>,
    %16 = vector.extract_strided_slice %11 {offsets = [0, 256], sizes = [64, 128], strides = [1, 1]} : vector<64x640xbf16> to vector<64x128xbf16>
    %c128 = arith.constant 128 : index
    %c0_12 = arith.constant 0 : index
    %17 = vector.load %arg11[%c128, %c0_12] : memref<320x128xbf16, #tpu.memory_space<vmem>>, vector<64x128xbf16>
    tpu.vector_store %arg11[%c128, %c0_12], %16 {strides = array<i32>} : memref<320x128xbf16, #tpu.memory_space<vmem>>, vector<64x128xbf16>,
    %18 = vector.extract_strided_slice %11 {offsets = [0, 384], sizes = [64, 128], strides = [1, 1]} : vector<64x640xbf16> to vector<64x128xbf16>
    %c192 = arith.constant 192 : index
    %c0_13 = arith.constant 0 : index
    %19 = vector.load %arg11[%c192, %c0_13] : memref<320x128xbf16, #tpu.memory_space<vmem>>, vector<64x128xbf16>
    tpu.vector_store %arg11[%c192, %c0_13], %18 {strides = array<i32>} : memref<320x128xbf16, #tpu.memory_space<vmem>>, vector<64x128xbf16>,
    %20 = vector.extract_strided_slice %11 {offsets = [0, 512], sizes = [64, 128], strides = [1, 1]} : vector<64x640xbf16> to vector<64x128xbf16>
    %c256 = arith.constant 256 : index
    %c0_14 = arith.constant 0 : index
    %21 = vector.load %arg11[%c256, %c0_14] : memref<320x128xbf16, #tpu.memory_space<vmem>>, vector<64x128xbf16>
    tpu.vector_store %arg11[%c256, %c0_14], %20 {strides = array<i32>} : memref<320x128xbf16, #tpu.memory_space<vmem>>, vector<64x128xbf16>,
    %c0_15 = arith.constant 0 : index
    %c0_16 = arith.constant 0 : index
    %22 = vector.load %arg1[%c0_15, %c0_16] : memref<64x320xbf16, #tpu.memory_space<vmem>>, vector<64x320xbf16>
    %c0_17 = arith.constant 0 : index
    %c0_18 = arith.constant 0 : index
    %23 = vector.load %arg11[%c0_17, %c0_18] : memref<320x128xbf16, #tpu.memory_space<vmem>>, vector<320x128xbf16>
    %cst_19 = arith.constant dense<0.000000e+00> : vector<64x128xf32>
    %24 = tpu.matmul %22, %23, %cst_19 {dimension_numbers = #tpu.dot_dimension_numbers<[1], [0], [0], [1], [0, 0, 1, 1], [], []>} : vector<64x320xbf16>, vector<320x128xbf16>, vector<64x128xf32> -> vector<64x128xf32>
    %c0_20 = arith.constant 0 : index
    %c0_21 = arith.constant 0 : index
    %c0_22 = arith.constant 0 : index
    %25 = vector.load %arg5[%c0_20, %c0_21, %c0_22] : memref<2x1x128xf32, #tpu.memory_space<vmem>>, vector<1x1x128xf32>
    %26 = vector.shape_cast %25 : vector<1x1x128xf32> to vector<1x128xf32>
    %27 = vector.broadcast %26 : vector<1x128xf32> to vector<64x128xf32>
    %28 = arith.addf %24, %27 : vector<64x128xf32>
    %cst_23 = arith.constant 0.000000e+00 : f32
    %29 = vector.broadcast %cst_23 : f32 to vector<64x128xf32>
    %30 = arith.maximumf %28, %29 : vector<64x128xf32>
    %31 = arith.truncf %30 : vector<64x128xf32> to vector<64x128xbf16>
    %c1 = arith.constant 1 : index
    %c0_24 = arith.constant 0 : index
    %c0_25 = arith.constant 0 : index
    %32 = vector.load %arg4[%c1, %c0_24, %c0_25] : memref<2x128x640xbf16, #tpu.memory_space<vmem>>, vector<1x128x640xbf16>
    %33 = vector.shape_cast %32 : vector<1x128x640xbf16> to vector<128x640xbf16>
    %cst_26 = arith.constant dense<0.000000e+00> : vector<64x640xf32>
    %34 = tpu.matmul %31, %33, %cst_26 {dimension_numbers = #tpu.dot_dimension_numbers<[1], [0], [0], [1], [0, 0, 1, 1], [], []>} : vector<64x128xbf16>, vector<128x640xbf16>, vector<64x640xf32> -> vector<64x640xf32>
    %35 = arith.truncf %34 : vector<64x640xf32> to vector<64x640xbf16>
    %36 = vector.extract_strided_slice %35 {offsets = [0, 0], sizes = [64, 128], strides = [1, 1]} : vector<64x640xbf16> to vector<64x128xbf16>
    %c0_27 = arith.constant 0 : index
    %c0_28 = arith.constant 0 : index
    %37 = vector.load %arg11[%c0_27, %c0_28] : memref<320x128xbf16, #tpu.memory_space<vmem>>, vector<64x128xbf16>
    tpu.vector_store %arg11[%c0_27, %c0_28], %36 {strides = array<i32>} : memref<320x128xbf16, #tpu.memory_space<vmem>>, vector<64x128xbf16>,
    %38 = vector.extract_strided_slice %35 {offsets = [0, 128], sizes = [64, 128], strides = [1, 1]} : vector<64x640xbf16> to vector<64x128xbf16>
    %c64_29 = arith.constant 64 : index
    %c0_30 = arith.constant 0 : index
    %39 = vector.load %arg11[%c64_29, %c0_30] : memref<320x128xbf16, #tpu.memory_space<vmem>>, vector<64x128xbf16>
    tpu.vector_store %arg11[%c64_29, %c0_30], %38 {strides = array<i32>} : memref<320x128xbf16, #tpu.memory_space<vmem>>, vector<64x128xbf16>,
    %40 = vector.extract_strided_slice %35 {offsets = [0, 256], sizes = [64, 128], strides = [1, 1]} : vector<64x640xbf16> to vector<64x128xbf16>
    %c128_31 = arith.constant 128 : index
    %c0_32 = arith.constant 0 : index
    %41 = vector.load %arg11[%c128_31, %c0_32] : memref<320x128xbf16, #tpu.memory_space<vmem>>, vector<64x128xbf16>
    tpu.vector_store %arg11[%c128_31, %c0_32], %40 {strides = array<i32>} : memref<320x128xbf16, #tpu.memory_space<vmem>>, vector<64x128xbf16>,
    %42 = vector.extract_strided_slice %35 {offsets = [0, 384], sizes = [64, 128], strides = [1, 1]} : vector<64x640xbf16> to vector<64x128xbf16>
    %c192_33 = arith.constant 192 : index
    %c0_34 = arith.constant 0 : index
    %43 = vector.load %arg11[%c192_33, %c0_34] : memref<320x128xbf16, #tpu.memory_space<vmem>>, vector<64x128xbf16>
    tpu.vector_store %arg11[%c192_33, %c0_34], %42 {strides = array<i32>} : memref<320x128xbf16, #tpu.memory_space<vmem>>, vector<64x128xbf16>,
    %44 = vector.extract_strided_slice %35 {offsets = [0, 512], sizes = [64, 128], strides = [1, 1]} : vector<64x640xbf16> to vector<64x128xbf16>
    %c256_35 = arith.constant 256 : index
    %c0_36 = arith.constant 0 : index
    %45 = vector.load %arg11[%c256_35, %c0_36] : memref<320x128xbf16, #tpu.memory_space<vmem>>, vector<64x128xbf16>
    tpu.vector_store %arg11[%c256_35, %c0_36], %44 {strides = array<i32>} : memref<320x128xbf16, #tpu.memory_space<vmem>>, vector<64x128xbf16>,
    %c0_37 = arith.constant 0 : index
    %c0_38 = arith.constant 0 : index
    %46 = vector.load %arg1[%c0_37, %c0_38] : memref<64x320xbf16, #tpu.memory_space<vmem>>, vector<64x320xbf16>
    %c0_39 = arith.constant 0 : index
    %c0_40 = arith.constant 0 : index
    %47 = vector.load %arg11[%c0_39, %c0_40] : memref<320x128xbf16, #tpu.memory_space<vmem>>, vector<320x128xbf16>
    %cst_41 = arith.constant dense<0.000000e+00> : vector<64x128xf32>
    %48 = tpu.matmul %46, %47, %cst_41 {dimension_numbers = #tpu.dot_dimension_numbers<[1], [0], [0], [1], [0, 0, 1, 1], [], []>} : vector<64x320xbf16>, vector<320x128xbf16>, vector<64x128xf32> -> vector<64x128xf32>
    %c1_42 = arith.constant 1 : index
    %c0_43 = arith.constant 0 : index
    %c0_44 = arith.constant 0 : index
    %49 = vector.load %arg5[%c1_42, %c0_43, %c0_44] : memref<2x1x128xf32, #tpu.memory_space<vmem>>, vector<1x1x128xf32>
    %50 = vector.shape_cast %49 : vector<1x1x128xf32> to vector<1x128xf32>
    %51 = vector.broadcast %50 : vector<1x128xf32> to vector<64x128xf32>
    %52 = arith.addf %48, %51 : vector<64x128xf32>
    %cst_45 = arith.constant 0.000000e+00 : f32
    %53 = vector.broadcast %cst_45 : f32 to vector<64x128xf32>
    %54 = arith.maximumf %52, %53 : vector<64x128xf32>
    %55 = arith.truncf %54 : vector<64x128xf32> to vector<64x128xbf16>
    %c0_46 = arith.constant 0 : index
    %c0_47 = arith.constant 0 : index
    %56 = vector.load %arg6[%c0_46, %c0_47] : memref<128x128xbf16, #tpu.memory_space<vmem>>, vector<128x128xbf16>
    %cst_48 = arith.constant dense<0.000000e+00> : vector<64x128xf32>
    %57 = tpu.matmul %55, %56, %cst_48 {dimension_numbers = #tpu.dot_dimension_numbers<[1], [0], [0], [1], [0, 0, 1, 1], [], []>} : vector<64x128xbf16>, vector<128x128xbf16>, vector<64x128xf32> -> vector<64x128xf32>
    %c0_49 = arith.constant 0 : index
    %c0_50 = arith.constant 0 : index
    %58 = vector.load %arg7[%c0_49, %c0_50] : memref<1x128xf32, #tpu.memory_space<vmem>>, vector<1x128xf32>
    %59 = vector.broadcast %58 : vector<1x128xf32> to vector<64x128xf32>
    %60 = arith.addf %57, %59 : vector<64x128xf32>
    %cst_51 = arith.constant 0.000000e+00 : f32
    %61 = vector.broadcast %cst_51 : f32 to vector<64x128xf32>
    %62 = arith.maximumf %60, %61 : vector<64x128xf32>
    %63 = arith.truncf %62 : vector<64x128xf32> to vector<64x128xbf16>
    %c0_52 = arith.constant 0 : index
    %c0_53 = arith.constant 0 : index
    %64 = vector.load %arg8[%c0_52, %c0_53] : memref<128x128xbf16, #tpu.memory_space<vmem>>, vector<128x128xbf16>
    %cst_54 = arith.constant dense<0.000000e+00> : vector<64x128xf32>
    %65 = tpu.matmul %63, %64, %cst_54 {dimension_numbers = #tpu.dot_dimension_numbers<[1], [0], [0], [1], [0, 0, 1, 1], [], []>} : vector<64x128xbf16>, vector<128x128xbf16>, vector<64x128xf32> -> vector<64x128xf32>
    %c0_55 = arith.constant 0 : index
    %c0_56 = arith.constant 0 : index
    %66 = vector.load %arg9[%c0_55, %c0_56] : memref<1x128xf32, #tpu.memory_space<vmem>>, vector<1x128xf32>
    %67 = vector.broadcast %66 : vector<1x128xf32> to vector<64x128xf32>
    %68 = arith.addf %65, %67 : vector<64x128xf32>
    %c0_57 = arith.constant 0 : index
    %c0_58 = arith.constant 0 : index
    %69 = vector.load %arg10[%c0_57, %c0_58] : memref<64x128xf32, #tpu.memory_space<vmem>>, vector<64x128xf32>
    tpu.vector_store %arg10[%c0_57, %c0_58], %68 {strides = array<i32>} : memref<64x128xf32, #tpu.memory_space<vmem>>, vector<64x128xf32>,
    return
  }
}

</mosaic_0001>

<bundles_post_ra>
// kernel: tpu_custom_call.1
= control target key start
LH: loop header
LB: loop body
LE: loop exit
PB: predicated region body
PF: predicated region fallthrough
CT: control target
= control target key end

     0   :  { %15 = vsyncpa [#allocation4], 0  ;;  %s3697_s0 = inlined_call_operand.hbm [shape: f32[64,256], index: 0, kind: input, shape index: {}]   ;;  %s3698_s1 = inlined_call_operand.hbm [shape: bf16[64,320], index: 1, kind: input, shape index: {}]   ;;  %s3699_s2 = inlined_call_operand.hbm [shape: bf16[256,128], index: 2, kind: input, shape index: {}]   ;;  %s3700_s3 = inlined_call_operand.vmem [shape: f32[1,128], index: 3, kind: input, shape index: {}]   ;;  %s3701_s4 = inlined_call_operand.hbm [shape: bf16[2,128,640], index: 4, kind: input, shape index: {}]   ;;  %s3702_s5 = inlined_call_operand.vmem [shape: f32[2,1,128], index: 5, kind: input, shape index: {}]   ;;  %s3703_s6 = inlined_call_operand.hbm [shape: bf16[128,128], index: 6, kind: input, shape index: {}]   ;;  %s3704_s7 = inlined_call_operand.vmem [shape: f32[1,128], index: 7, kind: input, shape index: {}]   ;;  %s3705_s8 = inlined_call_operand.hbm [shape: bf16[128,128], index: 8, kind: input, shape index: {}]   ;;  %s3706_s9 = inlined_call_operand.vmem [shape: f32[1,128], index: 9, kind: input, shape index: {}]   ;;  %s3707_s10 = inlined_call_operand.hbm [shape: f32[64,128], index: 10, kind: output, shape index: {}]  }
   0x1   :  { %16 = vsyncpa [#allocation7], 0 }
   0x2   :  { %17 = vsyncpa [#allocation10], 0 }
   0x3   :  { %18 = vsyncpa [#allocation13], 0  ;;  %s37_s15 = sshll.u32 %s3698_s1, 4  ;;  %s38_s15 = int_to_ptr.hbm [resolvable:$true] %s37_s15 }
   0x4   :  { %19 = vsyncpa [#allocation5], 0  ;;  %s3547_s16 = smov [#allocation6]   ;;  %s65_s20 = sshll.u32 %s3701_s4, 4  ;;  %s66_s20 = int_to_ptr.hbm [resolvable:$true] %s65_s20 }
   0x5   :  { %s39_s17 = sshll.u32 %s3547_s16, 4  ;;  %s3548_s21 = smov 192   ;;  %s40_s17 = int_to_ptr.vmem [resolvable:$true] %s39_s17 }
   0x6   :  { %s3549_s22 = smov 12   ;;  %s3550_s23 = smov [#allocation9]  }
   0x7   :  { %45 = dma.hbm_to_vmem [thread:$0]  %s38_s15, 1536, %s40_s17, [#allocation7], %s3548_s21, %s3548_s21, %s3549_s22  }
   0x8   :  { %s67_s24 = sshll.u32 %s3550_s23, 4  ;;  %s3551_s25 = smov 320   ;;  %s68_s24 = int_to_ptr.vmem [resolvable:$true] %s67_s24 }
   0x9   :  { %s3552_s26 = smov 20   ;;  %s24_s28 = sshll.u32 %s3697_s0, 4  ;;  %s25_s28 = int_to_ptr.hbm [resolvable:$true] %s24_s28 }
   0xa   :  { %73 = dma.hbm_to_vmem [thread:$0]  %s66_s20, 10240, %s68_s24, [#allocation10], %s3551_s25, %s3551_s25, %s3552_s26  }
   0xb   :  { %s3553_s29 = smov [#allocation3]   ;;  %s50_s12 = sshll.u32 %s3699_s2, 4  ;;  %s51_s12 = int_to_ptr.hbm [resolvable:$true] %s50_s12 }
   0xc   :  { %s26_s30 = sshll.u32 %s3553_s29, 4  ;;  %s3554_s13 = smov 256   ;;  %s27_s30 = int_to_ptr.vmem [resolvable:$true] %s26_s30 }
   0xd   :  { %s3555_s14 = smov 16   ;;  %s3556_s15 = smov [#allocation8]  }
   0xe   :  { %32 = dma.hbm_to_vmem [thread:$0]  %s25_s28, 2048, %s27_s30, [#allocation4], %s3554_s13, %s3554_s13, %s3555_s14  }
   0xf   :  { %s52_s16 = sshll.u32 %s3556_s15, 4  ;;  %s3557_s17 = smov 64   ;;  %s53_s16 = int_to_ptr.vmem [resolvable:$true] %s52_s16 }
  0x10   :  { %s3558_s18 = smov 4   ;;  %s80_s20 = sshll.u32 %s3703_s6, 4  ;;  %s81_s20 = int_to_ptr.hbm [resolvable:$true] %s80_s20 }
  0x11   :  { %58 = dma.hbm_to_vmem [thread:$0]  %s51_s12, 2048, %s53_s16, [#allocation7], %s3557_s17, %s3557_s17, %s3558_s18  }
  0x12   :  { %s3559_s21 = smov [#allocation11]   ;;  %s95_s24 = sshll.u32 %s3705_s8, 4  ;;  %s96_s24 = int_to_ptr.hbm [resolvable:$true] %s95_s24 }
  0x13   :  { %s82_s22 = sshll.u32 %s3559_s21, 4  ;;  %s3560_s25 = smov [#allocation12]   ;;  %s83_s22 = int_to_ptr.vmem [resolvable:$true] %s82_s22 }
  0x14   :  { %88 = dma.hbm_to_vmem [thread:$0]  %s81_s20, 1024, %s83_s22, [#allocation10], %s3557_s17, %s3557_s17, %s3558_s18  }
  0x15   :  { %s97_s26 = sshll.u32 %s3560_s25, 4  ;;  %s98_s26 = int_to_ptr.vmem [resolvable:$true] %s97_s26 }
  0x16   :  { %103 = dma.hbm_to_vmem [thread:$0]  %s96_s24, 1024, %s98_s26, [#allocation13], %s3557_s17, %s3557_s17, %s3558_s18  }
  0x17   :  { %3537 = dma.done.wait [#allocation4], 2048  }
  0x18   :  { %3538 = vsyncadd [#allocation4], 4294965248 }
  0x19   :  { %3539 = dma.done.wait [#allocation7], 3584  }
  0x1a   :  { %3540 = vsyncadd [#allocation7], 4294963712 }
  0x1b   :  { %3541 = dma.done.wait [#allocation10], 11264  }
  0x1c   :  { %3542 = vsyncadd [#allocation10], 4294956032 }
  0x1d   :  { %3543 = dma.done.wait [#allocation13], 1024  }
  0x1e   :  { %3544 = vsyncadd [#allocation13], 4294966272  ;;  %v3036_v0 = vld [vmem:[#allocation8 + $0x38] sm:$0xff]  ;;  %v3035_v2 = vld [vmem:[#allocation8 + $0x30] sm:$0xff]  ;;  %vm1102_vm0 = vcmask 523264   ;;  %s2300_s13 = sshll.u32 %s3707_s10, 4  ;;  %s2301_s13 = int_to_ptr.hbm [resolvable:$true] %s2300_s13 }
  0x1f   :  { %v3044_v1 = vld [vmem:[#allocation8 + $0x78] sm:$0xff]  ;;  %287 = vmatpush.bf16.msra.mxu0 %v3036_v0  ;;  %v3043_v3 = vld [vmem:[#allocation8 + $0x70] sm:$0xff]  ;;  %v3034_v4 = vld [vmem:[#allocation8 + $0x28] sm:$0xff]  ;;  %s3562_s14 = smov 128   ;;  %s3563_s15 = smov 8  }
  0x20   :  { %316 = vmatpush.bf16.msra.mxu1 %v3044_v1  ;;  %v3042_v5 = vld [vmem:[#allocation8 + $0x68] sm:$0xff]  ;;  %v3033_v6 = vld [vmem:[#allocation8 + $0x20] sm:$0xff]  ;;  %v3032_v8 = vld [vmem:[#allocation8 + $0x18] sm:$0xff] }
  0x21   :  { %v3041_v7 = vld [vmem:[#allocation8 + $0x60] sm:$0xff]  ;;  %v3040_v9 = vld [vmem:[#allocation8 + $0x58] sm:$0xff]  ;;  %v3031_v10 = vld [vmem:[#allocation8 + $0x10] sm:$0xff] }
  0x22   :  { %v3039_v11 = vld [vmem:[#allocation8 + $0x50] sm:$0xff]  ;;  %v3030_v12 = vld [vmem:[#allocation8 + $0x8] sm:$0xff]  ;;  %v3029_v14 = vld [vmem:[#allocation8] sm:$0xff] }
  0x23   :  { %288 = vmatpush.bf16.msra.mxu0 %v3035_v2  ;;  %v3038_v13 = vld [vmem:[#allocation8 + $0x48] sm:$0xff]  ;;  %v3037_v15 = vld [vmem:[#allocation8 + $0x40] sm:$0xff]  ;;  %v133_v17 = vld [vmem:[#allocation3 + $0x10] sm:$0xff] }
  0x24   :  { %317 = vmatpush.bf16.msra.mxu1 %v3043_v3  ;;  %v131_v16 = vld [vmem:[#allocation3] sm:$0xff]  ;;  %v132_v18 = vld [vmem:[#allocation3 + $0x8] sm:$0xff]  ;;  %v134_v19 = vld [vmem:[#allocation3 + $0x18] sm:$0xff] }
  0x25   :  { %v147_v20 = vpack.c.bf16 %v133_v17, %v131_v16  ;;  %v148_v21 = vpack.c.bf16 %v134_v19, %v132_v18  ;;  %v135_v22 = vld [vmem:[#allocation3 + $0x20] sm:$0xff]  ;;  %v137_v23 = vld [vmem:[#allocation3 + $0x30] sm:$0xff]  ;;  %v136_v24 = vld [vmem:[#allocation3 + $0x28] sm:$0xff] }
  0x26   :  { %v138_v25 = vld [vmem:[#allocation3 + $0x38] sm:$0xff]  ;;  %v149_v26 = vpack.c.bf16 %v137_v23, %v135_v22  ;;  %v3082_v29 = vld [vmem:[#allocation9 + $0x128] sm:$0xf0]  ;;  %v2524_v32 = vld [vmem:[#allocation9 + $0x12c] sm:$0xf0] }
  0x27   :  { %289 = vmatpush.bf16.msra.mxu0 %v3034_v4  ;;  %v150_v27 = vpack.c.bf16 %v138_v25, %v136_v24  ;;  %v2522_v28 = vld [vmem:[#allocation9 + $0x118] sm:$0xf]  ;;  %v3080_v30 = vld [vmem:[#allocation9 + $0x11c] sm:$0xf]  ;;  %v2530_v33 = vld [vmem:[#allocation9 + $0x120] sm:$0xf] }
  0x28   :  { %318 = vmatpush.bf16.msra.mxu1 %v3042_v5  ;;  %v2523_v31 = vor.u32 %v3082_v29, %v2522_v28  ;;  %v3083_v34 = vld [vmem:[#allocation9 + $0x130] sm:$0xf0]  ;;  %v2527_v35 = vor.u32 %v3080_v30, %v2524_v32  ;;  %v3081_v37 = vld [vmem:[#allocation9 + $0x124] sm:$0xf]  ;;  %v2532_v38 = vld [vmem:[#allocation9 + $0x134] sm:$0xf0] }
  0x29   :  { %v2531_v36 = vor.u32 %v3083_v34, %v2530_v33  ;;  %v2502_v39 = vld [vmem:[#allocation9 + $0xf0] sm:$0xf]  ;;  %v2535_v40 = vor.u32 %v3081_v37, %v2532_v38  ;;  %v3077_v41 = vld [vmem:[#allocation9 + $0x100] sm:$0xf0]  ;;  %v3075_v42 = vld [vmem:[#allocation9 + $0xf4] sm:$0xf] }
  0x2a   :  { %605 = vmatpush.bf16.msra.mxu2 %v2523_v31  ;;  %v2504_v43 = vld [vmem:[#allocation9 + $0x104] sm:$0xf0]  ;;  %634 = vmatpush.bf16.msra.mxu3 %v2527_v35  ;;  %v2503_v44 = vor.u32 %v3077_v41, %v2502_v39  ;;  %v2510_v46 = vld [vmem:[#allocation9 + $0xf8] sm:$0xf]  ;;  %v3078_v47 = vld [vmem:[#allocation9 + $0x108] sm:$0xf0] }
  0x2b   :  { %290 = vmatpush.bf16.msra.mxu0 %v3033_v6  ;;  %v2507_v45 = vor.u32 %v3075_v42, %v2504_v43  ;;  %v3076_v48 = vld [vmem:[#allocation9 + $0xfc] sm:$0xf]  ;;  %v2511_v49 = vor.u32 %v3078_v47, %v2510_v46  ;;  %v2512_v50 = vld [vmem:[#allocation9 + $0x10c] sm:$0xf0]  ;;  %v2482_v51 = vld [vmem:[#allocation9 + $0xc8] sm:$0xf] }
  0x2c   :  { %319 = vmatpush.bf16.msra.mxu1 %v3041_v7  ;;  %v3072_v52 = vld [vmem:[#allocation9 + $0xd8] sm:$0xf0]  ;;  %v2515_v53 = vor.u32 %v3076_v48, %v2512_v50  ;;  %v3070_v54 = vld [vmem:[#allocation9 + $0xcc] sm:$0xf]  ;;  %v2484_v55 = vld [vmem:[#allocation9 + $0xdc] sm:$0xf0] }
  0x2d   :  { %v2490_v56 = vld [vmem:[#allocation9 + $0xd0] sm:$0xf]  ;;  %v139_v57 = vld [vmem:[#allocation3 + $0x40] sm:$0xff]  ;;  %v2483_v58 = vor.u32 %v3072_v52, %v2482_v51  ;;  %v3071_v60 = vld [vmem:[#allocation9 + $0xd4] sm:$0xf]  ;;  %v2487_v63 = vor.u32 %v3070_v54, %v2484_v55 }
  0x2e   :  { %606 = vmatpush.bf16.msra.mxu2 %v2503_v44  ;;  %v3073_v59 = vld [vmem:[#allocation9 + $0xe0] sm:$0xf0]  ;;  %v2492_v61 = vld [vmem:[#allocation9 + $0xe4] sm:$0xf0]  ;;  %v141_v62 = vld [vmem:[#allocation3 + $0x50] sm:$0xff]  ;;  %635 = vmatpush.bf16.msra.mxu3 %v2507_v45 }
  0x2f   :  { %291 = vmatpush.bf16.msra.mxu0 %v3032_v8  ;;  %v2491_v0 = vor.u32 %v3073_v59, %v2490_v56  ;;  %v2462_v1 = vld [vmem:[#allocation9 + $0xa0] sm:$0xf]  ;;  %v3067_v2 = vld [vmem:[#allocation9 + $0xb0] sm:$0xf0]  ;;  %v140_v3 = vld [vmem:[#allocation3 + $0x48] sm:$0xff]  ;;  %v2495_v5 = vor.u32 %v3071_v60, %v2492_v61 }
  0x30   :  { %320 = vmatpush.bf16.msra.mxu1 %v3040_v9  ;;  %v142_v4 = vld [vmem:[#allocation3 + $0x58] sm:$0xff]  ;;  %v3065_v6 = vld [vmem:[#allocation9 + $0xa4] sm:$0xf]  ;;  %v2470_v8 = vld [vmem:[#allocation9 + $0xa8] sm:$0xf] }
  0x31   :  { %v2464_v7 = vld [vmem:[#allocation9 + $0xb4] sm:$0xf0]  ;;  %v3068_v9 = vld [vmem:[#allocation9 + $0xb8] sm:$0xf0]  ;;  %v143_v18 = vld [vmem:[#allocation3 + $0x60] sm:$0xff] }
  0x32   :  { %607 = vmatpush.bf16.msra.mxu2 %v2483_v58  ;;  %636 = vmatpush.bf16.msra.mxu3 %v2487_v63  ;;  %v2471_v16 = vor.u32 %v3068_v9, %v2470_v8  ;;  %v145_v19 = vld [vmem:[#allocation3 + $0x70] sm:$0xff]  ;;  %v2442_v24 = vld [vmem:[#allocation9 + $0x78] sm:$0xf]  ;;  %v3062_v25 = vld [vmem:[#allocation9 + $0x88] sm:$0xf0] }
  0x33   :  { %292 = vmatpush.bf16.msra.mxu0 %v3031_v10  ;;  %v2463_v10 = vor.u32 %v3067_v2, %v2462_v1  ;;  %v153_v22 = vpack.c.bf16 %v145_v19, %v143_v18  ;;  %v2444_v28 = vld [vmem:[#allocation9 + $0x8c] sm:$0xf0]  ;;  %v2450_v29 = vld [vmem:[#allocation9 + $0x80] sm:$0xf]  ;;  %v3063_v30 = vld [vmem:[#allocation9 + $0x90] sm:$0xf0] }
  0x34   :  { %321 = vmatpush.bf16.msra.mxu1 %v3039_v11  ;;  %v3066_v11 = vld [vmem:[#allocation9 + $0xac] sm:$0xf]  ;;  %v2451_v32 = vor.u32 %v3063_v30, %v2450_v29  ;;  %v3061_v33 = vld [vmem:[#allocation9 + $0x84] sm:$0xf]  ;;  %v2452_v34 = vld [vmem:[#allocation9 + $0x94] sm:$0xf0] }
  0x35   :  { %v2455_v35 = vor.u32 %v3061_v33, %v2452_v34  ;;  %v3057_v37 = vld [vmem:[#allocation9 + $0x60] sm:$0xf0]  ;;  %v3055_v38 = vld [vmem:[#allocation9 + $0x54] sm:$0xf]  ;;  %v2430_v41 = vld [vmem:[#allocation9 + $0x58] sm:$0xf] }
  0x36   :  { %608 = vmatpush.bf16.msra.mxu2 %v2463_v10  ;;  %v3058_v42 = vld [vmem:[#allocation9 + $0x68] sm:$0xf0]  ;;  %v3056_v45 = vld [vmem:[#allocation9 + $0x5c] sm:$0xf]  ;;  %v2432_v46 = vld [vmem:[#allocation9 + $0x6c] sm:$0xf0] }
  0x37   :  { %293 = vmatpush.bf16.msra.mxu0 %v3030_v12  ;;  %v2472_v12 = vld [vmem:[#allocation9 + $0xbc] sm:$0xf0]  ;;  %v2431_v44 = vor.u32 %v3058_v42, %v2430_v41  ;;  %v2435_v47 = vor.u32 %v3056_v45, %v2432_v46  ;;  %v2402_v48 = vld [vmem:[#allocation9 + $0x28] sm:$0xf]  ;;  %v3050_v50 = vld [vmem:[#allocation9 + $0x2c] sm:$0xf] }
  0x38   :  { %322 = vmatpush.bf16.msra.mxu1 %v3038_v13  ;;  %v151_v13 = vpack.c.bf16 %v141_v62, %v139_v57  ;;  %v2475_v17 = vor.u32 %v3066_v11, %v2472_v12  ;;  %v2404_v52 = vld [vmem:[#allocation9 + $0x3c] sm:$0xf0]  ;;  %v3053_v54 = vld [vmem:[#allocation9 + $0x40] sm:$0xf0]  ;;  %v3051_v57 = vld [vmem:[#allocation9 + $0x34] sm:$0xf] }
  0x39   :  { %v2407_v55 = vor.u32 %v3050_v50, %v2404_v52  ;;  %v2412_v58 = vld [vmem:[#allocation9 + $0x44] sm:$0xf0]  ;;  %v2382_v60 = vld [vmem:[#allocation9] sm:$0xf]  ;;  %v3047_v61 = vld [vmem:[#allocation9 + $0x10] sm:$0xf0] }
  0x3a   :  { %v2415_v59 = vor.u32 %v3051_v57, %v2412_v58  ;;  %v3045_v62 = vld [vmem:[#allocation9 + $0x4] sm:$0xf]  ;;  %v2383_v63 = vor.u32 %v3047_v61, %v2382_v60  ;;  %v2390_v1 = vld [vmem:[#allocation9 + $0x8] sm:$0xf]  ;;  %v3048_v2 = vld [vmem:[#allocation9 + $0x18] sm:$0xf0] }
  0x3b   :  { %294 = vmatpush.bf16.msra.mxu0 %v3029_v14  ;;  %v152_v14 = vpack.c.bf16 %v142_v4, %v140_v3  ;;  %v2391_v4 = vor.u32 %v3048_v2, %v2390_v1  ;;  %v3640_v10 = vld [vmem:[%s3700_s3] ss:$0 sm:$0xff]  ;;  %v2538_v18 = vld [vmem:[#allocation9 + $0x128] sm:$0xf]  ;;  %v3084_v19 = vld [vmem:[#allocation9 + $0x138] sm:$0xf0] }
  0x3c   :  { %323 = vmatpush.bf16.msra.mxu1 %v3037_v15  ;;  %v2467_v15 = vor.u32 %v3065_v6, %v2464_v7  ;;  %v2392_v6 = vld [vmem:[#allocation9 + $0x1c] sm:$0xf0]  ;;  %v2478_v33 = vld [vmem:[#allocation9 + $0xb0] sm:$0xf]  ;;  %v3069_v34 = vld [vmem:[#allocation9 + $0xc0] sm:$0xf0] }
  0x3d   :  { %v3059_v45 = vld [vmem:[#allocation9 + $0x70] sm:$0xf0]  ;;  %v2398_v50 = vld [vmem:[#allocation9 + $0x10] sm:$0xf] }
  0x3e   :  { %295 = vmatmul.bf16.vlgmr.msra.gmra.mxu0 %v147_v20  ;;  %637 = vmatpush.bf16.msra.mxu3 %v2467_v15  ;;  %v144_v20 = vld [vmem:[#allocation3 + $0x68] sm:$0xff] }
  0x3f   :  { %324 = vmatmul.bf16.vlgmr.msra.gmra.mxu1 %v148_v21  ;;  %663 = vmatpush.bf16.msrb.mxu0 %v2531_v36  ;;  %v146_v21 = vld [vmem:[#allocation3 + $0x78] sm:$0xff]  ;;  %v2422_v36 = vld [vmem:[#allocation9 + $0x50] sm:$0xf] }
  0x40   :  { %692 = vmatpush.bf16.msrb.mxu1 %v2535_v40  ;;  %v154_v23 = vpack.c.bf16 %v146_v21, %v144_v20  ;;  %v2423_v39 = vor.u32 %v3057_v37, %v2422_v36  ;;  %v2424_v40 = vld [vmem:[#allocation9 + $0x64] sm:$0xf0]  ;;  %v2539_v20 = vor.u32 %v3084_v19, %v2538_v18  ;;  %v2479_v37 = vor.u32 %v3069_v34, %v2478_v33 }
  0x41   :  { %v2427_v43 = vor.u32 %v3055_v38, %v2424_v40  ;;  %v3064_v40 = vld [vmem:[#allocation9 + $0x98] sm:$0xf0] }
  0x43   :  { %664 = vmatpush.bf16.msrb.mxu0 %v2511_v49  ;;  %v3052_v49 = vld [vmem:[#allocation9 + $0x38] sm:$0xf0] }
  0x44   :  { %693 = vmatpush.bf16.msrb.mxu1 %v2515_v53  ;;  %v2403_v51 = vor.u32 %v3052_v49, %v2402_v48  ;;  %v2410_v53 = vld [vmem:[#allocation9 + $0x30] sm:$0xf]  ;;  %v3054_v48 = vld [vmem:[#allocation9 + $0x48] sm:$0xf0] }
  0x45   :  { %v2411_v56 = vor.u32 %v3053_v54, %v2410_v53 }
  0x47   :  { %665 = vmatpush.bf16.msrb.mxu0 %v2491_v0  ;;  %v2384_v0 = vld [vmem:[#allocation9 + $0x14] sm:$0xf0] }
  0x48   :  { %694 = vmatpush.bf16.msrb.mxu1 %v2495_v5  ;;  %v2387_v3 = vor.u32 %v3045_v62, %v2384_v0  ;;  %v3046_v5 = vld [vmem:[#allocation9 + $0xc] sm:$0xf] }
  0x49   :  { %v2395_v7 = vor.u32 %v3046_v5, %v2392_v6 }
  0x4b   :  { %666 = vmatpush.bf16.msrb.mxu0 %v2471_v16 }
  0x4c   :  { %695 = vmatpush.bf16.msrb.mxu1 %v2475_v17 }
  0x4e   :  { %300 = vmatmul.bf16.gmra.mxu0 %v149_v26  ;;  %v3060_v26 = vld [vmem:[#allocation9 + $0x7c] sm:$0xf] }
  0x4f   :  { %329 = vmatmul.bf16.gmra.mxu1 %v150_v27  ;;  %v2443_v27 = vor.u32 %v3062_v25, %v2442_v24  ;;  %v2447_v31 = vor.u32 %v3060_v26, %v2444_v28  ;;  %667 = vmatpush.bf16.msrb.mxu0 %v2451_v32  ;;  %v3079_v24 = vld [vmem:[#allocation9 + $0x110] sm:$0xf0]  ;;  %v2498_v26 = vld [vmem:[#allocation9 + $0xd8] sm:$0xf] }
  0x50   :  { %696 = vmatpush.bf16.msrb.mxu1 %v2455_v35 }
  0x51   :  { %609 = vmatpush.bf16.msra.mxu2 %v2443_v27  ;;  %638 = vmatpush.bf16.msra.mxu3 %v2447_v31  ;;  %v3074_v27 = vld [vmem:[#allocation9 + $0xe8] sm:$0xf0] }
  0x52   :  { %v2499_v29 = vor.u32 %v3074_v27, %v2498_v26 }
  0x53   :  { %668 = vmatpush.bf16.msrb.mxu0 %v2431_v44  ;;  %v2438_v44 = vld [vmem:[#allocation9 + $0x60] sm:$0xf] }
  0x54   :  { %697 = vmatpush.bf16.msrb.mxu1 %v2435_v47  ;;  %v2439_v46 = vor.u32 %v3059_v45, %v2438_v44  ;;  %v2418_v47 = vld [vmem:[#allocation9 + $0x38] sm:$0xf] }
  0x55   :  { %610 = vmatpush.bf16.msra.mxu2 %v2423_v39  ;;  %639 = vmatpush.bf16.msra.mxu3 %v2427_v43  ;;  %v2458_v39 = vld [vmem:[#allocation9 + $0x88] sm:$0xf]  ;;  %v2419_v49 = vor.u32 %v3054_v48, %v2418_v47 }
  0x56   :  { %v2459_v41 = vor.u32 %v3064_v40, %v2458_v39 }
  0x57   :  { %669 = vmatpush.bf16.msrb.mxu0 %v2411_v56 }
  0x58   :  { %698 = vmatpush.bf16.msrb.mxu1 %v2415_v59 }
  0x59   :  { %611 = vmatpush.bf16.msra.mxu2 %v2403_v51  ;;  %640 = vmatpush.bf16.msra.mxu3 %v2407_v55  ;;  %v3049_v51 = vld [vmem:[#allocation9 + $0x20] sm:$0xf0] }
  0x5a   :  { %v2399_v56 = vor.u32 %v3049_v51, %v2398_v50 }
  0x5b   :  { %670 = vmatpush.bf16.msrb.mxu0 %v2391_v4 }
  0x5c   :  { %699 = vmatpush.bf16.msrb.mxu1 %v2395_v7 }
  0x5d   :  { %612 = vmatpush.bf16.msra.mxu2 %v2383_v63  ;;  %641 = vmatpush.bf16.msra.mxu3 %v2387_v3 }
  0x5e   :  { %305 = vmatmul.bf16.gmra.mxu0 %v151_v13 }
  0x5f   :  { %334 = vmatmul.bf16.gmra.mxu1 %v152_v14 }
  0x61   :  { %721 = vmatpush.bf16.msrb.mxu2 %v2539_v20 }
  0x6e   :  { %310 = vmatmul.bf16.gmra.mxu0 %v153_v22 }
  0x6f   :  { %339 = vmatmul.bf16.gmra.mxu1 %v154_v23  ;;  %v2518_v23 = vld [vmem:[#allocation9 + $0x100] sm:$0xf] }
  0x70   :  { %v2519_v25 = vor.u32 %v3079_v24, %v2518_v23 }
  0x72   :  { %722 = vmatpush.bf16.msrb.mxu2 %v2519_v25 }
  0x76   :  { %723 = vmatpush.bf16.msrb.mxu2 %v2499_v29 }
  0x7a   :  { %724 = vmatpush.bf16.msrb.mxu2 %v2479_v37 }
  0x7e   :  { %725 = vmatpush.bf16.msrb.mxu2 %v2459_v41 }
  0x82   :  { %726 = vmatpush.bf16.msrb.mxu2 %v2439_v46 }
  0x86   :  { %727 = vmatpush.bf16.msrb.mxu2 %v2419_v49 }
  0x8a   :  { %728 = vmatpush.bf16.msrb.mxu2 %v2399_v56 }
  0xbb   :  { %v296_v8 = vpop.f32.mrf.mxu0 }
  0xbc   :  { %v325_v9 = vpop.f32.mrf.mxu1  ;;  %v297_v11 = vadd.f32 %v3640_v10, %v296_v8 }
  0xbe   :  { %v326_v15 = vadd.f32 %v325_v9, %v297_v11 }
  0xc3   :  { %v298_v12 = vpop.f32.mrf.mxu0 }
  0xc4   :  { %v327_v13 = vpop.f32.mrf.mxu1  ;;  %v299_v14 = vadd.f32 %v3640_v10, %v298_v12 }
  0xc6   :  { %v328_v16 = vadd.f32 %v327_v13, %v299_v14 }
  0xc8   :  { %v3644_v17 = vpack.c.bf16 %v328_v16, %v326_v15 }
  0xca   :  { %613 = vmatmul.bf16.vlgmr.msra.gmra.mxu2 %v3644_v17  ;;  %642 = vmatmul.bf16.vlgmr.msra.gmra.mxu3 %v3644_v17 }
  0xcb   :  { %671 = vmatmul.bf16.vlgmr.msrb.gmra.mxu0 %v3644_v17  ;;  %700 = vmatmul.bf16.vlgmr.msrb.gmra.mxu1 %v3644_v17  ;;  %v301_v21 = vpop.f32.mrf.mxu0 }
  0xcc   :  { %v330_v22 = vpop.f32.mrf.mxu1  ;;  %v302_v28 = vadd.f32 %v3640_v10, %v301_v21 }
  0xce   :  { %v331_v35 = vadd.f32 %v330_v22, %v302_v28 }
  0xd3   :  { %v303_v30 = vpop.f32.mrf.mxu0 }
  0xd4   :  { %v332_v31 = vpop.f32.mrf.mxu1  ;;  %v304_v32 = vadd.f32 %v3640_v10, %v303_v30 }
  0xd6   :  { %v333_v36 = vadd.f32 %v332_v31, %v304_v32 }
  0xd8   :  { %v346_v38 = vpack.c.bf16 %v333_v36, %v331_v35 }
  0xda   :  { %618 = vmatmul.bf16.gmra.mxu2 %v346_v38  ;;  %647 = vmatmul.bf16.gmra.mxu3 %v346_v38 }
  0xdb   :  { %676 = vmatmul.bf16.gmra.mxu0 %v346_v38  ;;  %705 = vmatmul.bf16.gmra.mxu1 %v346_v38  ;;  %v306_v42 = vpop.f32.mrf.mxu0 }
  0xdc   :  { %v335_v43 = vpop.f32.mrf.mxu1  ;;  %v307_v52 = vadd.f32 %v3640_v10, %v306_v42 }
  0xde   :  { %v336_v57 = vadd.f32 %v335_v43, %v307_v52 }
  0xe3   :  { %v308_v53 = vpop.f32.mrf.mxu0 }
  0xe4   :  { %v337_v54 = vpop.f32.mrf.mxu1  ;;  %v309_v55 = vadd.f32 %v3640_v10, %v308_v53 }
  0xe6   :  { %v338_v58 = vadd.f32 %v337_v54, %v309_v55 }
  0xe8   :  { %v347_v59 = vpack.c.bf16 %v338_v58, %v336_v57 }
  0xea   :  { %623 = vmatmul.bf16.gmra.mxu2 %v347_v59  ;;  %652 = vmatmul.bf16.gmra.mxu3 %v347_v59 }
  0xeb   :  { %681 = vmatmul.bf16.gmra.mxu0 %v347_v59  ;;  %710 = vmatmul.bf16.gmra.mxu1 %v347_v59  ;;  %v311_v60 = vpop.f32.mrf.mxu0 }
  0xec   :  { %v340_v61 = vpop.f32.mrf.mxu1  ;;  %v312_v62 = vadd.f32 %v3640_v10, %v311_v60 }
  0xee   :  { %v341_v2 = vadd.f32 %v340_v61, %v312_v62 }
  0xf3   :  { %v313_v63 = vpop.f32.mrf.mxu0 }
  0xf4   :  { %v314_v0 = vadd.f32 %v3640_v10, %v313_v63  ;;  %v342_v1 = vpop.f32.mrf.mxu1 }
  0xf6   :  { %v343_v3 = vadd.f32 %v342_v1, %v314_v0 }
  0xf8   :  { %v348_v4 = vpack.c.bf16 %v343_v3, %v341_v2 }
  0xfa   :  { %628 = vmatmul.bf16.gmra.mxu2 %v348_v4  ;;  %657 = vmatmul.bf16.gmra.mxu3 %v348_v4 }
  0xfb   :  { %686 = vmatmul.bf16.gmra.mxu0 %v348_v4  ;;  %715 = vmatmul.bf16.gmra.mxu1 %v348_v4 }
 0x10a   :  { %729 = vmatmul.bf16.vlgmr.msrb.gmra.mxu2 %v3644_v17 }
 0x11a   :  { %734 = vmatmul.bf16.gmra.mxu2 %v346_v38 }
 0x12a   :  { %739 = vmatmul.bf16.gmra.mxu2 %v347_v59 }
 0x13a   :  { %744 = vmatmul.bf16.gmra.mxu2 %v348_v4 }
 0x148   :  { %v672_v5 = vpop.f32.mrf.mxu0  ;;  %v701_v6 = vpop.f32.mrf.mxu1 }
 0x149   :  { %v751_v7 = vpack.c.bf16 %v701_v6, %v672_v5 }
 0x14b   :  { %v830_v8 = vrot.slane %v751_v7, 4 }
 0x14d   :  { %846 = vst [vmem:[#allocation2 + $0x60] sm:$0xf] %v830_v8  ;;  %v614_v9 = vpop.f32.mrf.mxu2  ;;  %v643_v10 = vpop.f32.mrf.mxu3 }
 0x14e   :  { %v750_v11 = vpack.c.bf16 %v643_v10, %v614_v9 }
 0x150   :  { %v790_v12 = vrot.slane %v750_v11, 4  ;;  %v674_v13 = vpop.f32.mrf.mxu0  ;;  %v703_v14 = vpop.f32.mrf.mxu1 }
 0x151   :  { %v3228_v15 = vpack.c.bf16 %v674_v13, %v672_v5  ;;  %v754_v16 = vpack.c.bf16 %v703_v14, %v674_v13 }
 0x152   :  { %806 = vst [vmem:[#allocation2 + $0x20] sm:$0xf] %v790_v12 }
 0x153   :  { %3328 = vst [vmem:[#allocation2 + $0x40] sm:$0xff] %v3228_v15   ;;  %v831_v18 = vrot.slane %v754_v16, 4 }
 0x155   :  { %847 = vst [vmem:[#allocation2 + $0x64] sm:$0xf] %v831_v18  ;;  %v616_v17 = vpop.f32.mrf.mxu2  ;;  %v645_v19 = vpop.f32.mrf.mxu3 }
 0x156   :  { %v3208_v20 = vpack.c.bf16 %v616_v17, %v614_v9  ;;  %v753_v21 = vpack.c.bf16 %v645_v19, %v616_v17 }
 0x158   :  { %3209 = vst [vmem:[#allocation2] sm:$0xff] %v3208_v20   ;;  %v791_v22 = vrot.slane %v753_v21, 4  ;;  %v677_v23 = vpop.f32.mrf.mxu0  ;;  %v706_v24 = vpop.f32.mrf.mxu1 }
 0x159   :  { %v757_v25 = vpack.c.bf16 %v706_v24, %v677_v23 }
 0x15a   :  { %807 = vst [vmem:[#allocation2 + $0x24] sm:$0xf] %v791_v22 }
 0x15b   :  { %v832_v26 = vrot.slane %v757_v25, 4 }
 0x15c   :  { %v3109_v21 = vld [vmem:[#allocation2 + $0x60] sm:$0xff] }
 0x15d   :  { %848 = vst [vmem:[#allocation2 + $0x68] sm:$0xf] %v832_v26  ;;  %v619_v27 = vpop.f32.mrf.mxu2  ;;  %v648_v28 = vpop.f32.mrf.mxu3 }
 0x15e   :  { %v756_v29 = vpack.c.bf16 %v648_v28, %v619_v27 }
 0x160   :  { %v792_v30 = vrot.slane %v756_v29, 4  ;;  %v679_v31 = vpop.f32.mrf.mxu0  ;;  %v708_v32 = vpop.f32.mrf.mxu1 }
 0x161   :  { %v3233_v33 = vpack.c.bf16 %v679_v31, %v677_v23  ;;  %v760_v34 = vpack.c.bf16 %v708_v32, %v679_v31  ;;  %v3101_v25 = vld [vmem:[#allocation2 + $0x20] sm:$0xff] }
 0x162   :  { %808 = vst [vmem:[#allocation2 + $0x28] sm:$0xf] %v792_v30  ;;  %v3105_v32 = vld [vmem:[#allocation2 + $0x40] sm:$0xff] }
 0x163   :  { %3329 = vst [vmem:[#allocation2 + $0x48] sm:$0xff] %v3233_v33   ;;  %v833_v35 = vrot.slane %v760_v34, 4  ;;  %v2542_v34 = vld [vmem:[#allocation6] sm:$0xf] }
 0x165   :  { %849 = vst [vmem:[#allocation2 + $0x6c] sm:$0xf] %v833_v35  ;;  %v621_v36 = vpop.f32.mrf.mxu2  ;;  %v650_v37 = vpop.f32.mrf.mxu3  ;;  %v3086_v35 = vld [vmem:[#allocation6 + $0x8] sm:$0xf0] }
 0x166   :  { %v3213_v38 = vpack.c.bf16 %v621_v36, %v619_v27  ;;  %v759_v39 = vpack.c.bf16 %v650_v37, %v621_v36  ;;  %v3097_v37 = vld [vmem:[#allocation2] sm:$0xff] }
 0x168   :  { %3325 = vst [vmem:[#allocation2 + $0x8] sm:$0xff] %v3213_v38   ;;  %v793_v40 = vrot.slane %v759_v39, 4  ;;  %v682_v41 = vpop.f32.mrf.mxu0  ;;  %v711_v42 = vpop.f32.mrf.mxu1  ;;  %v2543_v38 = vor.u32 %v3086_v35, %v2542_v34  ;;  %v3085_v39 = vld [vmem:[#allocation6 + $0x4] sm:$0xf]  ;;  %v2802_v34 = vld [vmem:[#allocation9 + $0x238] sm:$0xf] }
 0x169   :  { %v763_v43 = vpack.c.bf16 %v711_v42, %v682_v41  ;;  %v3150_v35 = vld [vmem:[#allocation9 + $0x248] sm:$0xf0] }
 0x16a   :  { %809 = vst [vmem:[#allocation2 + $0x2c] sm:$0xf] %v793_v40  ;;  %v3106_v28 = vld [vmem:[#allocation2 + $0x48] sm:$0xff]  ;;  %v2544_v40 = vld [vmem:[#allocation6 + $0xc] sm:$0xf0] }
 0x16b   :  { %v834_v44 = vrot.slane %v763_v43, 4  ;;  %v2547_v42 = vor.u32 %v3085_v39, %v2544_v40  ;;  %v2804_v39 = vld [vmem:[#allocation9 + $0x24c] sm:$0xf0]  ;;  %v2774_v40 = vld [vmem:[#allocation9 + $0x208] sm:$0xf] }
 0x16c   :  { %v3110_v18 = vld [vmem:[#allocation2 + $0x68] sm:$0xff] }
 0x16d   :  { %850 = vst [vmem:[#allocation2 + $0x70] sm:$0xf] %v834_v44  ;;  %v624_v45 = vpop.f32.mrf.mxu2  ;;  %v653_v46 = vpop.f32.mrf.mxu3  ;;  %v2554_v44 = vld [vmem:[#allocation6 + $0x18] sm:$0xf] }
 0x16e   :  { %v762_v47 = vpack.c.bf16 %v653_v46, %v624_v45 }
 0x16f   :  { %v3098_v33 = vld [vmem:[#allocation2 + $0x8] sm:$0xff] }
 0x170   :  { %v794_v48 = vrot.slane %v762_v47, 4  ;;  %v684_v49 = vpop.f32.mrf.mxu0  ;;  %v713_v50 = vpop.f32.mrf.mxu1 }
 0x171   :  { %v3238_v51 = vpack.c.bf16 %v684_v49, %v682_v41  ;;  %v766_v52 = vpack.c.bf16 %v713_v50, %v684_v49  ;;  %v3102_v22 = vld [vmem:[#allocation2 + $0x28] sm:$0xff] }
 0x172   :  { %810 = vst [vmem:[#allocation2 + $0x30] sm:$0xf] %v794_v48  ;;  %v3088_v48 = vld [vmem:[#allocation6 + $0x1c] sm:$0xf]  ;;  %v2556_v49 = vld [vmem:[#allocation6 + $0x24] sm:$0xf0] }
 0x173   :  { %3330 = vst [vmem:[#allocation2 + $0x50] sm:$0xff] %v3238_v51   ;;  %v835_v53 = vrot.slane %v766_v52, 4  ;;  %v2559_v50 = vor.u32 %v3088_v48, %v2556_v49  ;;  %v3145_v48 = vld [vmem:[#allocation9 + $0x220] sm:$0xf0]  ;;  %v3143_v49 = vld [vmem:[#allocation9 + $0x214] sm:$0xf] }
 0x175   :  { %851 = vst [vmem:[#allocation2 + $0x74] sm:$0xf] %v835_v53  ;;  %v626_v54 = vpop.f32.mrf.mxu2  ;;  %v655_v55 = vpop.f32.mrf.mxu3  ;;  %v2566_v53 = vld [vmem:[#allocation6 + $0x30] sm:$0xf] }
 0x176   :  { %v3218_v56 = vpack.c.bf16 %v626_v54, %v624_v45  ;;  %v765_v57 = vpack.c.bf16 %v655_v55, %v626_v54  ;;  %v3089_v45 = vld [vmem:[#allocation6 + $0x20] sm:$0xf0]  ;;  %v3092_v54 = vld [vmem:[#allocation6 + $0x38] sm:$0xf0] }
 0x177   :  { %v2555_v47 = vor.u32 %v3089_v45, %v2554_v44  ;;  %v2567_v55 = vor.u32 %v3092_v54, %v2566_v53  ;;  %v2776_v44 = vld [vmem:[#allocation9 + $0x21c] sm:$0xf0]  ;;  %v3139_v54 = vld [vmem:[#allocation9 + $0x1f0] sm:$0xf0] }
 0x178   :  { %3326 = vst [vmem:[#allocation2 + $0x10] sm:$0xff] %v3218_v56   ;;  %v795_v58 = vrot.slane %v765_v57, 4  ;;  %v687_v59 = vpop.f32.mrf.mxu0  ;;  %v716_v60 = vpop.f32.mrf.mxu1  ;;  %v3091_v57 = vld [vmem:[#allocation6 + $0x34] sm:$0xf]  ;;  %v2754_v53 = vld [vmem:[#allocation9 + $0x1e0] sm:$0xf] }
 0x179   :  { %v769_v61 = vpack.c.bf16 %v716_v60, %v687_v59 }
 0x17a   :  { %811 = vst [vmem:[#allocation2 + $0x34] sm:$0xf] %v795_v58  ;;  %v3107_v26 = vld [vmem:[#allocation2 + $0x50] sm:$0xff]  ;;  %v2568_v58 = vld [vmem:[#allocation6 + $0x3c] sm:$0xf0] }
 0x17b   :  { %v836_v62 = vrot.slane %v769_v61, 4  ;;  %v2571_v60 = vor.u32 %v3091_v57, %v2568_v58  ;;  %v2756_v57 = vld [vmem:[#allocation9 + $0x1f4] sm:$0xf0]  ;;  %v2762_v58 = vld [vmem:[#allocation9 + $0x1e8] sm:$0xf] }
 0x17c   :  { %v3111_v15 = vld [vmem:[#allocation2 + $0x70] sm:$0xff] }
 0x17d   :  { %852 = vst [vmem:[#allocation2 + $0x78] sm:$0xf] %v836_v62  ;;  %v629_v63 = vpop.f32.mrf.mxu2  ;;  %v658_v0 = vpop.f32.mrf.mxu3  ;;  %v2550_v62 = vld [vmem:[#allocation6 + $0x8] sm:$0xf] }
 0x17e   :  { %v768_v1 = vpack.c.bf16 %v658_v0, %v629_v63 }
 0x17f   :  { %v3099_v30 = vld [vmem:[#allocation2 + $0x10] sm:$0xff] }
 0x180   :  { %v796_v2 = vrot.slane %v768_v1, 4  ;;  %v689_v3 = vpop.f32.mrf.mxu0  ;;  %v718_v4 = vpop.f32.mrf.mxu1  ;;  %v2578_v1 = vld [vmem:[#allocation6 + $0x48] sm:$0xf] }
 0x181   :  { %v3243_v5 = vpack.c.bf16 %v689_v3, %v687_v59  ;;  %v772_v6 = vpack.c.bf16 %v718_v4, %v689_v3  ;;  %v3103_v19 = vld [vmem:[#allocation2 + $0x30] sm:$0xff] }
 0x182   :  { %812 = vst [vmem:[#allocation2 + $0x38] sm:$0xf] %v796_v2  ;;  %v3095_v2 = vld [vmem:[#allocation6 + $0x50] sm:$0xf0] }
 0x183   :  { %3331 = vst [vmem:[#allocation2 + $0x58] sm:$0xff] %v3243_v5   ;;  %v837_v7 = vrot.slane %v772_v6, 4  ;;  %v2579_v4 = vor.u32 %v3095_v2, %v2578_v1  ;;  %v3094_v5 = vld [vmem:[#allocation6 + $0x4c] sm:$0xf]  ;;  %v2580_v6 = vld [vmem:[#allocation6 + $0x54] sm:$0xf0] }
 0x184   :  { %v2734_v1 = vld [vmem:[#allocation9 + $0x1b8] sm:$0xf]  ;;  %v3134_v2 = vld [vmem:[#allocation9 + $0x1c8] sm:$0xf0] }
 0x185   :  { %853 = vst [vmem:[#allocation2 + $0x7c] sm:$0xf] %v837_v7  ;;  %v631_v8 = vpop.f32.mrf.mxu2  ;;  %v660_v9 = vpop.f32.mrf.mxu3  ;;  %v2583_v7 = vor.u32 %v3094_v5, %v2580_v6  ;;  %v2736_v5 = vld [vmem:[#allocation9 + $0x1cc] sm:$0xf0]  ;;  %v2742_v6 = vld [vmem:[#allocation9 + $0x1c0] sm:$0xf] }
 0x186   :  { %v3223_v10 = vpack.c.bf16 %v631_v8, %v629_v63  ;;  %v771_v11 = vpack.c.bf16 %v660_v9, %v631_v8  ;;  %v3087_v63 = vld [vmem:[#allocation6 + $0x10] sm:$0xf0]  ;;  %v2562_v8 = vld [vmem:[#allocation6 + $0x20] sm:$0xf]  ;;  %v3090_v9 = vld [vmem:[#allocation6 + $0x28] sm:$0xf0] }
 0x187   :  { %v2551_v3 = vor.u32 %v3087_v63, %v2550_v62  ;;  %v3138_v62 = vld [vmem:[#allocation9 + $0x1ec] sm:$0xf]  ;;  %v2764_v63 = vld [vmem:[#allocation9 + $0x1fc] sm:$0xf0] }
 0x188   :  { %3327 = vst [vmem:[#allocation2 + $0x18] sm:$0xff] %v3223_v10   ;;  %v797_v12 = vrot.slane %v771_v11, 4  ;;  %v2563_v10 = vor.u32 %v3090_v9, %v2562_v8  ;;  %v2814_v11 = vld [vmem:[#allocation9 + $0x258] sm:$0xf] }
 0x18a   :  { %813 = vst [vmem:[#allocation2 + $0x3c] sm:$0xf] %v797_v12  ;;  %v3108_v23 = vld [vmem:[#allocation2 + $0x58] sm:$0xff]  ;;  %v3154_v12 = vld [vmem:[#allocation9 + $0x268] sm:$0xf0] }
 0x18c   :  { %v3112_v13 = vld [vmem:[#allocation2 + $0x78] sm:$0xff] }
 0x18d   :  { %v730_v14 = vpop.f32.mrf.mxu2  ;;  %1144 = vmatpush.bf16.msra.mxu0 %v3112_v13  ;;  %v3152_v13 = vld [vmem:[#allocation9 + $0x25c] sm:$0xf] }
 0x18f   :  { %v3100_v27 = vld [vmem:[#allocation2 + $0x18] sm:$0xff] }
 0x191   :  { %v3104_v16 = vld [vmem:[#allocation2 + $0x38] sm:$0xff]  ;;  %1145 = vmatpush.bf16.msra.mxu0 %v3111_v15  ;;  %v2816_v15 = vld [vmem:[#allocation9 + $0x26c] sm:$0xf0] }
 0x192   :  { %1115 = vmatpush.bf16.msrb.mxu3 %v3104_v16  ;;  %v2822_v16 = vld [vmem:[#allocation9 + $0x260] sm:$0xf] }
 0x195   :  { %v732_v17 = vpop.f32.mrf.mxu2  ;;  %1146 = vmatpush.bf16.msra.mxu0 %v3110_v18  ;;  %v3155_v18 = vld [vmem:[#allocation9 + $0x270] sm:$0xf0] }
 0x196   :  { %v3248_v20 = vpack.c.bf16 %v732_v17, %v730_v14  ;;  %1116 = vmatpush.bf16.msrb.mxu3 %v3103_v19  ;;  %v2815_v14 = vor.u32 %v3154_v12, %v2814_v11  ;;  %v2819_v17 = vor.u32 %v3152_v13, %v2816_v15  ;;  %v2823_v19 = vor.u32 %v3155_v18, %v2822_v16  ;;  %v2744_v11 = vld [vmem:[#allocation9 + $0x1d4] sm:$0xf0]  ;;  %v2714_v13 = vld [vmem:[#allocation9 + $0x190] sm:$0xf]  ;;  %v3127_v15 = vld [vmem:[#allocation9 + $0x194] sm:$0xf] }
 0x197   :  { %v2716_v18 = vld [vmem:[#allocation9 + $0x1a4] sm:$0xf0] }
 0x198   :  { %3332 = vst [vmem:[#allocation2 + $0x80] sm:$0xff] %v3248_v20   ;;  %v3153_v20 = vld [vmem:[#allocation9 + $0x264] sm:$0xf]  ;;  %1471 = vmatpush.bf16.msra.mxu2 %v2815_v14 }
 0x199   :  { %1147 = vmatpush.bf16.msra.mxu0 %v3109_v21  ;;  %v2824_v21 = vld [vmem:[#allocation9 + $0x274] sm:$0xf0]  ;;  %v3129_v14 = vld [vmem:[#allocation9 + $0x1a0] sm:$0xf0] }
 0x19a   :  { %1117 = vmatpush.bf16.msrb.mxu3 %v3102_v22  ;;  %v2827_v22 = vor.u32 %v3153_v20, %v2824_v21  ;;  %v2715_v16 = vor.u32 %v3129_v14, %v2714_v13  ;;  %v2719_v20 = vor.u32 %v3127_v15, %v2716_v18  ;;  %v2790_v18 = vld [vmem:[#allocation9 + $0x218] sm:$0xf] }
 0x19d   :  { %v735_v24 = vpop.f32.mrf.mxu2  ;;  %1148 = vmatpush.bf16.msra.mxu0 %v3108_v23  ;;  %v2574_v23 = vld [vmem:[#allocation6 + $0x38] sm:$0xf] }
 0x19e   :  { %1118 = vmatpush.bf16.msrb.mxu3 %v3101_v25 }
 0x19f   :  { %v3113_v0 = vld [vmem:[#allocation2 + $0x80] sm:$0xff] }
 0x1a1   :  { %1149 = vmatpush.bf16.msra.mxu0 %v3107_v26  ;;  %v2586_v26 = vld [vmem:[#allocation6 + $0x50] sm:$0xf] }
 0x1a2   :  { %1119 = vmatpush.bf16.msrb.mxu3 %v3100_v27  ;;  %v3096_v27 = vld [vmem:[#allocation6 + $0x58] sm:$0xf0] }
 0x1a5   :  { %v737_v29 = vpop.f32.mrf.mxu2  ;;  %1150 = vmatpush.bf16.msra.mxu0 %v3106_v28  ;;  %v2587_v28 = vor.u32 %v3096_v27, %v2586_v26  ;;  %v3124_v26 = vld [vmem:[#allocation9 + $0x178] sm:$0xf0]  ;;  %v3122_v27 = vld [vmem:[#allocation9 + $0x16c] sm:$0xf] }
 0x1a6   :  { %v3253_v31 = vpack.c.bf16 %v737_v29, %v735_v24  ;;  %1120 = vmatpush.bf16.msrb.mxu3 %v3099_v30  ;;  %v3093_v24 = vld [vmem:[#allocation6 + $0x40] sm:$0xf0]  ;;  %v2794_v29 = vld [vmem:[#allocation9 + $0x230] sm:$0xf] }
 0x1a7   :  { %v2575_v25 = vor.u32 %v3093_v24, %v2574_v23  ;;  %v3149_v30 = vld [vmem:[#allocation9 + $0x240] sm:$0xf0]  ;;  %v2724_v23 = vld [vmem:[#allocation9 + $0x1ac] sm:$0xf0] }
 0x1a8   :  { %3333 = vst [vmem:[#allocation2 + $0x88] sm:$0xff] %v3253_v31   ;;  %v3147_v31 = vld [vmem:[#allocation9 + $0x234] sm:$0xf] }
 0x1a9   :  { %1151 = vmatpush.bf16.msra.mxu0 %v3105_v32  ;;  %v2795_v32 = vor.u32 %v3149_v30, %v2794_v29  ;;  %v2696_v29 = vld [vmem:[#allocation9 + $0x17c] sm:$0xf0]  ;;  %v2702_v30 = vld [vmem:[#allocation9 + $0x170] sm:$0xf] }
 0x1aa   :  { %1121 = vmatpush.bf16.msrb.mxu3 %v3098_v33  ;;  %v2796_v33 = vld [vmem:[#allocation9 + $0x244] sm:$0xf0] }
 0x1ab   :  { %1472 = vmatpush.bf16.msra.mxu2 %v2795_v32  ;;  %v2699_v32 = vor.u32 %v3122_v27, %v2696_v29 }
 0x1ac   :  { %1152 = vmatmul.bf16.vlgmr.msra.gmra.mxu0 %v2547_v42  ;;  %v3144_v42 = vld [vmem:[#allocation9 + $0x218] sm:$0xf0] }
 0x1ad   :  { %v740_v36 = vpop.f32.mrf.mxu2  ;;  %1529 = vmatpush.bf16.msrb.mxu0 %v2823_v19  ;;  %v2775_v45 = vor.u32 %v3144_v42, %v2774_v40  ;;  %v3130_v19 = vld [vmem:[#allocation9 + $0x1a8] sm:$0xf0]  ;;  %v3117_v40 = vld [vmem:[#allocation9 + $0x144] sm:$0xf]  ;;  %v2676_v42 = vld [vmem:[#allocation9 + $0x154] sm:$0xf0] }
 0x1ae   :  { %1122 = vmatpush.bf16.msrb.mxu3 %v3097_v37  ;;  %v2803_v37 = vor.u32 %v3150_v35, %v2802_v34  ;;  %v3123_v34 = vld [vmem:[#allocation9 + $0x174] sm:$0xf]  ;;  %v2704_v35 = vld [vmem:[#allocation9 + $0x184] sm:$0xf0] }
 0x1af   :  { %v3114_v61 = vld [vmem:[#allocation2 + $0x88] sm:$0xff]  ;;  %1473 = vmatpush.bf16.msra.mxu2 %v2775_v45  ;;  %v2679_v45 = vor.u32 %v3117_v40, %v2676_v42  ;;  %v2710_v40 = vld [vmem:[#allocation9 + $0x178] sm:$0xf] }
 0x1b1   :  { %1123 = vmatmul.bf16.vlgmr.msrb.gmra.mxu3 %v2543_v38  ;;  %v3148_v38 = vld [vmem:[#allocation9 + $0x23c] sm:$0xf]  ;;  %1530 = vmatpush.bf16.msrb.mxu0 %v2803_v37 }
 0x1b2   :  { %1500 = vmatpush.bf16.msra.mxu3 %v2819_v17  ;;  %v2722_v17 = vld [vmem:[#allocation9 + $0x198] sm:$0xf] }
 0x1b3   :  { %v2723_v21 = vor.u32 %v3130_v19, %v2722_v17  ;;  %v3146_v17 = vld [vmem:[#allocation9 + $0x228] sm:$0xf0] }
 0x1b5   :  { %v742_v41 = vpop.f32.mrf.mxu2 }
 0x1b6   :  { %v3258_v43 = vpack.c.bf16 %v742_v41, %v740_v36  ;;  %v2799_v36 = vor.u32 %v3147_v31, %v2796_v33  ;;  %v2807_v41 = vor.u32 %v3148_v38, %v2804_v39  ;;  %v3125_v31 = vld [vmem:[#allocation9 + $0x180] sm:$0xf0]  ;;  %v2674_v38 = vld [vmem:[#allocation9 + $0x140] sm:$0xf]  ;;  %v3119_v39 = vld [vmem:[#allocation9 + $0x150] sm:$0xf0] }
 0x1b7   :  { %v2703_v33 = vor.u32 %v3125_v31, %v2702_v30  ;;  %v2750_v31 = vld [vmem:[#allocation9 + $0x1c8] sm:$0xf] }
 0x1b8   :  { %3334 = vst [vmem:[#allocation2 + $0x90] sm:$0xff] %v3258_v43   ;;  %v3142_v43 = vld [vmem:[#allocation9 + $0x20c] sm:$0xf]  ;;  %1501 = vmatpush.bf16.msra.mxu3 %v2799_v36  ;;  %v2707_v36 = vor.u32 %v3123_v34, %v2704_v35 }
 0x1bc   :  { %1157 = vmatmul.bf16.gmra.mxu0 %v2559_v50 }
 0x1bd   :  { %v745_v46 = vpop.f32.mrf.mxu2 }
 0x1bf   :  { %v3115_v59 = vld [vmem:[#allocation2 + $0x90] sm:$0xff] }
 0x1c1   :  { %1128 = vmatmul.bf16.gmra.mxu3 %v2555_v47  ;;  %v2782_v47 = vld [vmem:[#allocation9 + $0x210] sm:$0xf] }
 0x1c2   :  { %v2783_v50 = vor.u32 %v3145_v48, %v2782_v47  ;;  %v3118_v47 = vld [vmem:[#allocation9 + $0x14c] sm:$0xf]  ;;  %v2684_v48 = vld [vmem:[#allocation9 + $0x15c] sm:$0xf0] }
 0x1c4   :  { %1531 = vmatpush.bf16.msrb.mxu0 %v2783_v50 }
 0x1c5   :  { %v747_v51 = vpop.f32.mrf.mxu2 }
 0x1c6   :  { %v3263_v52 = vpack.c.bf16 %v747_v51, %v745_v46  ;;  %v2779_v46 = vor.u32 %v3142_v43, %v2776_v44  ;;  %v2784_v51 = vld [vmem:[#allocation9 + $0x224] sm:$0xf0]  ;;  %v3120_v44 = vld [vmem:[#allocation9 + $0x158] sm:$0xf0] }
 0x1c7   :  { %v2682_v43 = vld [vmem:[#allocation9 + $0x148] sm:$0xf] }
 0x1c8   :  { %3335 = vst [vmem:[#allocation2 + $0x98] sm:$0xff] %v3263_v52   ;;  %v2787_v52 = vor.u32 %v3143_v49, %v2784_v51  ;;  %1502 = vmatpush.bf16.msra.mxu3 %v2779_v46  ;;  %v2683_v46 = vor.u32 %v3120_v44, %v2682_v43  ;;  %v2687_v49 = vor.u32 %v3118_v47, %v2684_v48  ;;  %v3121_v47 = vld [vmem:[#allocation9 + $0x160] sm:$0xf0] }
 0x1cc   :  { %1162 = vmatmul.bf16.gmra.mxu0 %v2571_v60 }
 0x1cf   :  { %v3116_v56 = vld [vmem:[#allocation2 + $0x98] sm:$0xff] }
 0x1d0   :  { %1177 = vmatpush.bf16.msra.mxu1 %v3116_v56  ;;  %v2755_v56 = vor.u32 %v3139_v54, %v2754_v53  ;;  %v3664_v53 = vld [vmem:[%s3702_s5] ss:$0 sm:$0xff] }
 0x1d1   :  { %1133 = vmatmul.bf16.gmra.mxu3 %v2567_v55  ;;  %v3137_v55 = vld [vmem:[#allocation9 + $0x1e4] sm:$0xf] }
 0x1d2   :  { %v2759_v60 = vor.u32 %v3137_v55, %v2756_v57  ;;  %1474 = vmatpush.bf16.msra.mxu2 %v2755_v56 }
 0x1d4   :  { %1178 = vmatpush.bf16.msra.mxu1 %v3115_v59  ;;  %v3140_v59 = vld [vmem:[#allocation9 + $0x1f8] sm:$0xf0]  ;;  %1503 = vmatpush.bf16.msra.mxu3 %v2759_v60 }
 0x1d8   :  { %1179 = vmatpush.bf16.msra.mxu1 %v3114_v61  ;;  %v2763_v61 = vor.u32 %v3140_v59, %v2762_v58 }
 0x1da   :  { %1532 = vmatpush.bf16.msrb.mxu0 %v2763_v61 }
 0x1dc   :  { %1180 = vmatpush.bf16.msra.mxu1 %v3113_v0  ;;  %1167 = vmatmul.bf16.gmra.mxu0 %v2583_v7  ;;  %v2767_v0 = vor.u32 %v3138_v62, %v2764_v63  ;;  %v3135_v7 = vld [vmem:[#allocation9 + $0x1d0] sm:$0xf0] }
 0x1dd   :  { %v2743_v9 = vor.u32 %v3135_v7, %v2742_v6  ;;  %v3156_v6 = vld [vmem:[#allocation9 + $0x278] sm:$0xf0] }
 0x1df   :  { %2668 = vmatmul.msk.bf16.vlgmr.msra.gmra.mxu1 %vm1102_vm0, %v2551_v3  ;;  %v3132_v3 = vld [vmem:[#allocation9 + $0x1bc] sm:$0xf]  ;;  %1533 = vmatpush.bf16.msrb.mxu0 %v2743_v9 }
 0x1e0   :  { %1558 = vmatpush.bf16.msrb.mxu1 %v2827_v22  ;;  %v2739_v8 = vor.u32 %v3132_v3, %v2736_v5  ;;  %v3128_v22 = vld [vmem:[#allocation9 + $0x19c] sm:$0xf]  ;;  %v2830_v5 = vld [vmem:[#allocation9 + $0x268] sm:$0xf] }
 0x1e1   :  { %1138 = vmatmul.bf16.gmra.mxu3 %v2579_v4  ;;  %v2735_v4 = vor.u32 %v3134_v2, %v2734_v1  ;;  %v2727_v24 = vor.u32 %v3128_v22, %v2724_v23 }
 0x1e2   :  { %1504 = vmatpush.bf16.msra.mxu3 %v2739_v8  ;;  %v2831_v8 = vor.u32 %v3156_v6, %v2830_v5 }
 0x1e3   :  { %1475 = vmatpush.bf16.msra.mxu2 %v2735_v4  ;;  %1534 = vmatpush.bf16.msrb.mxu0 %v2723_v21  ;;  %v2791_v21 = vor.u32 %v3146_v17, %v2790_v18 }
 0x1e4   :  { %1559 = vmatpush.bf16.msrb.mxu1 %v2807_v41  ;;  %v2675_v41 = vor.u32 %v3119_v39, %v2674_v38  ;;  %v3131_v38 = vld [vmem:[#allocation9 + $0x1b0] sm:$0xf0] }
 0x1e6   :  { %1505 = vmatpush.bf16.msra.mxu3 %v2719_v20 }
 0x1e7   :  { %1476 = vmatpush.bf16.msra.mxu2 %v2715_v16  ;;  %1535 = vmatpush.bf16.msrb.mxu0 %v2703_v33 }
 0x1e8   :  { %1560 = vmatpush.bf16.msrb.mxu1 %v2787_v52 }
 0x1ea   :  { %1506 = vmatpush.bf16.msra.mxu3 %v2699_v32  ;;  %v3136_v32 = vld [vmem:[#allocation9 + $0x1d8] sm:$0xf0] }
 0x1eb   :  { %1536 = vmatpush.bf16.msrb.mxu0 %v2683_v46  ;;  %v2751_v34 = vor.u32 %v3136_v32, %v2750_v31  ;;  %v2690_v46 = vld [vmem:[#allocation9 + $0x150] sm:$0xf] }
 0x1ec   :  { %1561 = vmatpush.bf16.msrb.mxu1 %v2767_v0 }
 0x1ee   :  { %1507 = vmatpush.bf16.msra.mxu3 %v2679_v45 }
 0x1ef   :  { %2669 = vmatmul.msk.bf16.gmra.mxu1 %vm1102_vm0, %v2563_v10  ;;  %v3133_v10 = vld [vmem:[#allocation9 + $0x1c4] sm:$0xf] }
 0x1f0   :  { %v2747_v12 = vor.u32 %v3133_v10, %v2744_v11  ;;  %v2810_v11 = vld [vmem:[#allocation9 + $0x240] sm:$0xf] }
 0x1f2   :  { %1562 = vmatpush.bf16.msrb.mxu1 %v2747_v12  ;;  %v3151_v12 = vld [vmem:[#allocation9 + $0x250] sm:$0xf0] }
 0x1f3   :  { %v2811_v15 = vor.u32 %v3151_v12, %v2810_v11 }
 0x1f6   :  { %1563 = vmatpush.bf16.msrb.mxu1 %v2727_v24  ;;  %v2770_v24 = vld [vmem:[#allocation9 + $0x1f0] sm:$0xf] }
 0x1fa   :  { %1564 = vmatpush.bf16.msrb.mxu1 %v2707_v36 }
 0x1fe   :  { %1565 = vmatpush.bf16.msrb.mxu1 %v2687_v49 }
 0x1ff   :  { %2670 = vmatmul.msk.bf16.gmra.mxu1 %vm1102_vm0, %v2575_v25  ;;  %v2694_v25 = vld [vmem:[#allocation9 + $0x168] sm:$0xf] }
 0x20f   :  { %2671 = vmatmul.msk.bf16.gmra.mxu1 %vm1102_vm0, %v2587_v28  ;;  %v2695_v28 = vor.u32 %v3124_v26, %v2694_v25  ;;  %v3141_v25 = vld [vmem:[#allocation9 + $0x200] sm:$0xf0] }
 0x211   :  { %1477 = vmatpush.bf16.msra.mxu2 %v2695_v28  ;;  %v2771_v28 = vor.u32 %v3141_v25, %v2770_v24 }
 0x215   :  { %1478 = vmatpush.bf16.msra.mxu2 %v2675_v41  ;;  %v3126_v41 = vld [vmem:[#allocation9 + $0x188] sm:$0xf0] }
 0x216   :  { %v2711_v44 = vor.u32 %v3126_v41, %v2710_v40 }
 0x219   :  { %1587 = vmatpush.bf16.msrb.mxu2 %v2831_v8 }
 0x21d   :  { %1588 = vmatpush.bf16.msrb.mxu2 %v2811_v15 }
 0x221   :  { %1589 = vmatpush.bf16.msrb.mxu2 %v2791_v21 }
 0x225   :  { %1590 = vmatpush.bf16.msrb.mxu2 %v2771_v28 }
 0x229   :  { %v1153_v50 = vpop.f32.mrf.mxu0  ;;  %1591 = vmatpush.bf16.msrb.mxu2 %v2751_v34 }
 0x231   :  { %v1155_v52 = vpop.f32.mrf.mxu0 }
 0x234   :  { %v1124_v37 = vpop.f32.mrf.mxu3 }
 0x235   :  { %v1125_v55 = vadd.f32 %v3664_v53, %v1124_v37  ;;  %v2730_v37 = vld [vmem:[#allocation9 + $0x1a0] sm:$0xf] }
 0x236   :  { %v2731_v39 = vor.u32 %v3131_v38, %v2730_v37 }
 0x237   :  { %v1154_v58 = vadd.f32 %v1153_v50, %v1125_v55 }
 0x238   :  { %1592 = vmatpush.bf16.msrb.mxu2 %v2731_v39 }
 0x239   :  { %v1158_v57 = vpop.f32.mrf.mxu0 }
 0x23c   :  { %v1126_v51 = vpop.f32.mrf.mxu3  ;;  %1593 = vmatpush.bf16.msrb.mxu2 %v2711_v44 }
 0x23d   :  { %v1127_v59 = vadd.f32 %v3664_v53, %v1126_v51 }
 0x23f   :  { %v1156_v60 = vadd.f32 %v1155_v52, %v1127_v59  ;;  %v2691_v52 = vor.u32 %v3121_v47, %v2690_v46 }
 0x241   :  { %v1160_v3 = vpop.f32.mrf.mxu0  ;;  %1594 = vmatpush.bf16.msrb.mxu2 %v2691_v52 }
 0x244   :  { %v1129_v54 = vpop.f32.mrf.mxu3 }
 0x245   :  { %v1130_v7 = vadd.f32 %v3664_v53, %v1129_v54 }
 0x247   :  { %v1159_v13 = vadd.f32 %v1158_v57, %v1130_v7 }
 0x249   :  { %v1163_v16 = vpop.f32.mrf.mxu0 }
 0x24c   :  { %v1131_v63 = vpop.f32.mrf.mxu3 }
 0x24d   :  { %v1132_v14 = vadd.f32 %v3664_v53, %v1131_v63 }
 0x24f   :  { %v1161_v19 = vadd.f32 %v1160_v3, %v1132_v14 }
 0x251   :  { %v1165_v35 = vpop.f32.mrf.mxu0 }
 0x254   :  { %v1134_v10 = vpop.f32.mrf.mxu3 }
 0x255   :  { %v1135_v33 = vadd.f32 %v3664_v53, %v1134_v10 }
 0x257   :  { %v1164_v42 = vadd.f32 %v1163_v16, %v1135_v33 }
 0x259   :  { %v1168_v54 = vpop.f32.mrf.mxu0 }
 0x25c   :  { %v1182_v56 = vpop.f32.mrf.mxu1  ;;  %v1136_v29 = vpop.f32.mrf.mxu3 }
 0x25d   :  { %v1183_v61 = vadd.f32 %v1182_v56, %v1154_v58  ;;  %v1137_v43 = vadd.f32 %v3664_v53, %v1136_v29 }
 0x25f   :  { %v1202_v1 = vmax.f32 %v1183_v61, 0.0  ;;  %v1166_v48 = vadd.f32 %v1165_v35, %v1137_v43 }
 0x261   :  { %v1170_v63 = vpop.f32.mrf.mxu0 }
 0x264   :  { %v1184_v62 = vpop.f32.mrf.mxu1  ;;  %v1139_v45 = vpop.f32.mrf.mxu3 }
 0x265   :  { %v1185_v0 = vadd.f32 %v1184_v62, %v1156_v60  ;;  %v1140_v58 = vadd.f32 %v3664_v53, %v1139_v45 }
 0x267   :  { %v1203_v2 = vmax.f32 %v1185_v0, 0.0  ;;  %v1169_v61 = vadd.f32 %v1168_v54, %v1140_v58 }
 0x269   :  { %v3668_v4 = vpack.c.bf16 %v1203_v2, %v1202_v1 }
 0x26b   :  { %1479 = vmatmul.bf16.vlgmr.msra.gmra.mxu2 %v3668_v4  ;;  %1508 = vmatmul.bf16.vlgmr.msra.gmra.mxu3 %v3668_v4 }
 0x26c   :  { %1537 = vmatmul.bf16.vlgmr.msrb.gmra.mxu0 %v3668_v4  ;;  %1566 = vmatmul.bf16.vlgmr.msrb.gmra.mxu1 %v3668_v4  ;;  %v1187_v9 = vpop.f32.mrf.mxu1  ;;  %v1141_v59 = vpop.f32.mrf.mxu3 }
 0x26d   :  { %v1188_v20 = vadd.f32 %v1187_v9, %v1159_v13  ;;  %v1142_v62 = vadd.f32 %v3664_v53, %v1141_v59 }
 0x26f   :  { %v1204_v26 = vmax.f32 %v1188_v20, 0.0  ;;  %v1171_v0 = vadd.f32 %v1170_v63, %v1142_v62 }
 0x274   :  { %v1189_v22 = vpop.f32.mrf.mxu1 }
 0x275   :  { %v1190_v23 = vadd.f32 %v1189_v22, %v1161_v19 }
 0x277   :  { %v1205_v27 = vmax.f32 %v1190_v23, 0.0 }
 0x279   :  { %v1211_v30 = vpack.c.bf16 %v1205_v27, %v1204_v26 }
 0x27b   :  { %1484 = vmatmul.bf16.gmra.mxu2 %v1211_v30  ;;  %1513 = vmatmul.bf16.gmra.mxu3 %v1211_v30 }
 0x27c   :  { %1542 = vmatmul.bf16.gmra.mxu0 %v1211_v30  ;;  %1571 = vmatmul.bf16.gmra.mxu1 %v1211_v30  ;;  %v1192_v36 = vpop.f32.mrf.mxu1 }
 0x27d   :  { %v1193_v49 = vadd.f32 %v1192_v36, %v1164_v42 }
 0x27f   :  { %v1206_v55 = vmax.f32 %v1193_v49, 0.0 }
 0x284   :  { %v1194_v50 = vpop.f32.mrf.mxu1 }
 0x285   :  { %v1195_v51 = vadd.f32 %v1194_v50, %v1166_v48 }
 0x287   :  { %v1207_v56 = vmax.f32 %v1195_v51, 0.0 }
 0x289   :  { %v1212_v57 = vpack.c.bf16 %v1207_v56, %v1206_v55 }
 0x28b   :  { %1489 = vmatmul.bf16.gmra.mxu2 %v1212_v57  ;;  %1518 = vmatmul.bf16.gmra.mxu3 %v1212_v57 }
 0x28c   :  { %1547 = vmatmul.bf16.gmra.mxu0 %v1212_v57  ;;  %1576 = vmatmul.bf16.gmra.mxu1 %v1212_v57  ;;  %v1197_v60 = vpop.f32.mrf.mxu1 }
 0x28d   :  { %v1198_v1 = vadd.f32 %v1197_v60, %v1169_v61 }
 0x28f   :  { %v1208_v5 = vmax.f32 %v1198_v1, 0.0 }
 0x294   :  { %v1199_v2 = vpop.f32.mrf.mxu1 }
 0x295   :  { %v1200_v3 = vadd.f32 %v1199_v2, %v1171_v0 }
 0x297   :  { %v1209_v6 = vmax.f32 %v1200_v3, 0.0 }
 0x299   :  { %v1213_v7 = vpack.c.bf16 %v1209_v6, %v1208_v5 }
 0x29b   :  { %1494 = vmatmul.bf16.gmra.mxu2 %v1213_v7  ;;  %1523 = vmatmul.bf16.gmra.mxu3 %v1213_v7 }
 0x29c   :  { %1552 = vmatmul.bf16.gmra.mxu0 %v1213_v7  ;;  %1581 = vmatmul.bf16.gmra.mxu1 %v1213_v7 }
 0x2ab   :  { %1595 = vmatmul.bf16.vlgmr.msrb.gmra.mxu2 %v3668_v4 }
 0x2bb   :  { %1600 = vmatmul.bf16.gmra.mxu2 %v1211_v30 }
 0x2cb   :  { %1605 = vmatmul.bf16.gmra.mxu2 %v1212_v57 }
 0x2db   :  { %1610 = vmatmul.bf16.gmra.mxu2 %v1213_v7 }
 0x2e9   :  { %v1538_v8 = vpop.f32.mrf.mxu0  ;;  %v1567_v9 = vpop.f32.mrf.mxu1 }
 0x2ea   :  { %v1617_v53 = vpack.c.bf16 %v1567_v9, %v1538_v8 }
 0x2ec   :  { %v1696_v10 = vrot.slane %v1617_v53, 4 }
 0x2ee   :  { %1712 = vst [vmem:[#allocation2 + $0x60] sm:$0xf] %v1696_v10  ;;  %v1480_v11 = vpop.f32.mrf.mxu2  ;;  %v1509_v12 = vpop.f32.mrf.mxu3 }
 0x2ef   :  { %v1616_v13 = vpack.c.bf16 %v1509_v12, %v1480_v11 }
 0x2f1   :  { %v1656_v14 = vrot.slane %v1616_v13, 4  ;;  %v1540_v15 = vpop.f32.mrf.mxu0  ;;  %v1569_v16 = vpop.f32.mrf.mxu1 }
 0x2f2   :  { %v3288_v18 = vpack.c.bf16 %v1540_v15, %v1538_v8  ;;  %v1620_v17 = vpack.c.bf16 %v1569_v16, %v1540_v15 }
 0x2f3   :  { %1672 = vst [vmem:[#allocation2 + $0x20] sm:$0xf] %v1656_v14 }
 0x2f4   :  { %3339 = vst [vmem:[#allocation2 + $0x40] sm:$0xff] %v3288_v18   ;;  %v1697_v19 = vrot.slane %v1620_v17, 4 }
 0x2f6   :  { %1713 = vst [vmem:[#allocation2 + $0x64] sm:$0xf] %v1697_v19  ;;  %v1482_v4 = vpop.f32.mrf.mxu2  ;;  %v1511_v20 = vpop.f32.mrf.mxu3 }
 0x2f7   :  { %v3268_v21 = vpack.c.bf16 %v1482_v4, %v1480_v11  ;;  %v1619_v22 = vpack.c.bf16 %v1511_v20, %v1482_v4 }
 0x2f9   :  { %3269 = vst [vmem:[#allocation2] sm:$0xff] %v3268_v21   ;;  %v1657_v23 = vrot.slane %v1619_v22, 4  ;;  %v1543_v24 = vpop.f32.mrf.mxu0  ;;  %v1572_v25 = vpop.f32.mrf.mxu1 }
 0x2fa   :  { %v1623_v26 = vpack.c.bf16 %v1572_v25, %v1543_v24 }
 0x2fb   :  { %1673 = vst [vmem:[#allocation2 + $0x24] sm:$0xf] %v1657_v23 }
 0x2fc   :  { %v1698_v27 = vrot.slane %v1623_v26, 4 }
 0x2fd   :  { %v3181_v22 = vld [vmem:[#allocation2 + $0x60] sm:$0xff] }
 0x2fe   :  { %1714 = vst [vmem:[#allocation2 + $0x68] sm:$0xf] %v1698_v27  ;;  %v1485_v28 = vpop.f32.mrf.mxu2  ;;  %v1514_v29 = vpop.f32.mrf.mxu3 }
 0x2ff   :  { %v1622_v30 = vpack.c.bf16 %v1514_v29, %v1485_v28 }
 0x301   :  { %v1658_v31 = vrot.slane %v1622_v30, 4  ;;  %v1545_v32 = vpop.f32.mrf.mxu0  ;;  %v1574_v33 = vpop.f32.mrf.mxu1 }
 0x302   :  { %v3293_v34 = vpack.c.bf16 %v1545_v32, %v1543_v24  ;;  %v1626_v35 = vpack.c.bf16 %v1574_v33, %v1545_v32  ;;  %v3173_v26 = vld [vmem:[#allocation2 + $0x20] sm:$0xff] }
 0x303   :  { %1674 = vst [vmem:[#allocation2 + $0x28] sm:$0xf] %v1658_v31  ;;  %v3177_v33 = vld [vmem:[#allocation2 + $0x40] sm:$0xff] }
 0x304   :  { %3340 = vst [vmem:[#allocation2 + $0x48] sm:$0xff] %v3293_v34   ;;  %v1699_v36 = vrot.slane %v1626_v35, 4  ;;  %v2835_v35 = vld [vmem:[#allocation6] sm:$0xf] }
 0x306   :  { %1715 = vst [vmem:[#allocation2 + $0x6c] sm:$0xf] %v1699_v36  ;;  %v1487_v37 = vpop.f32.mrf.mxu2  ;;  %v1516_v38 = vpop.f32.mrf.mxu3  ;;  %v3158_v36 = vld [vmem:[#allocation6 + $0x8] sm:$0xf0] }
 0x307   :  { %v3273_v39 = vpack.c.bf16 %v1487_v37, %v1485_v28  ;;  %v1625_v40 = vpack.c.bf16 %v1516_v38, %v1487_v37  ;;  %v3169_v38 = vld [vmem:[#allocation2] sm:$0xff] }
 0x309   :  { %3336 = vst [vmem:[#allocation2 + $0x8] sm:$0xff] %v3273_v39   ;;  %v1659_v41 = vrot.slane %v1625_v40, 4  ;;  %v1548_v42 = vpop.f32.mrf.mxu0  ;;  %v1577_v43 = vpop.f32.mrf.mxu1  ;;  %v2836_v39 = vor.u32 %v3158_v36, %v2835_v35  ;;  %v3157_v40 = vld [vmem:[#allocation6 + $0x4] sm:$0xf] }
 0x30a   :  { %v1629_v44 = vpack.c.bf16 %v1577_v43, %v1548_v42 }
 0x30b   :  { %1675 = vst [vmem:[#allocation2 + $0x2c] sm:$0xf] %v1659_v41  ;;  %v3178_v29 = vld [vmem:[#allocation2 + $0x48] sm:$0xff]  ;;  %v2837_v41 = vld [vmem:[#allocation6 + $0xc] sm:$0xf0] }
 0x30c   :  { %v1700_v45 = vrot.slane %v1629_v44, 4  ;;  %v2840_v43 = vor.u32 %v3157_v40, %v2837_v41 }
 0x30d   :  { %v3182_v19 = vld [vmem:[#allocation2 + $0x68] sm:$0xff] }
 0x30e   :  { %1716 = vst [vmem:[#allocation2 + $0x70] sm:$0xf] %v1700_v45  ;;  %v1490_v46 = vpop.f32.mrf.mxu2  ;;  %v1519_v47 = vpop.f32.mrf.mxu3  ;;  %v2847_v45 = vld [vmem:[#allocation6 + $0x18] sm:$0xf] }
 0x30f   :  { %v1628_v48 = vpack.c.bf16 %v1519_v47, %v1490_v46 }
 0x310   :  { %v3170_v34 = vld [vmem:[#allocation2 + $0x8] sm:$0xff] }
 0x311   :  { %v1660_v49 = vrot.slane %v1628_v48, 4  ;;  %v1550_v50 = vpop.f32.mrf.mxu0  ;;  %v1579_v51 = vpop.f32.mrf.mxu1 }
 0x312   :  { %v3298_v52 = vpack.c.bf16 %v1550_v50, %v1548_v42  ;;  %v1632_v54 = vpack.c.bf16 %v1579_v51, %v1550_v50  ;;  %v3174_v23 = vld [vmem:[#allocation2 + $0x28] sm:$0xff] }
 0x313   :  { %1676 = vst [vmem:[#allocation2 + $0x30] sm:$0xf] %v1660_v49  ;;  %v3160_v49 = vld [vmem:[#allocation6 + $0x1c] sm:$0xf]  ;;  %v2849_v50 = vld [vmem:[#allocation6 + $0x24] sm:$0xf0] }
 0x314   :  { %3341 = vst [vmem:[#allocation2 + $0x50] sm:$0xff] %v3298_v52   ;;  %v1701_v55 = vrot.slane %v1632_v54, 4  ;;  %v2852_v51 = vor.u32 %v3160_v49, %v2849_v50 }
 0x316   :  { %1717 = vst [vmem:[#allocation2 + $0x74] sm:$0xf] %v1701_v55  ;;  %v1492_v56 = vpop.f32.mrf.mxu2  ;;  %v1521_v57 = vpop.f32.mrf.mxu3  ;;  %v2859_v55 = vld [vmem:[#allocation6 + $0x30] sm:$0xf] }
 0x317   :  { %v3278_v58 = vpack.c.bf16 %v1492_v56, %v1490_v46  ;;  %v1631_v59 = vpack.c.bf16 %v1521_v57, %v1492_v56  ;;  %v3161_v46 = vld [vmem:[#allocation6 + $0x20] sm:$0xf0]  ;;  %v3164_v56 = vld [vmem:[#allocation6 + $0x38] sm:$0xf0] }
 0x318   :  { %v2848_v48 = vor.u32 %v3161_v46, %v2847_v45  ;;  %v2860_v57 = vor.u32 %v3164_v56, %v2859_v55 }
 0x319   :  { %3337 = vst [vmem:[#allocation2 + $0x10] sm:$0xff] %v3278_v58   ;;  %v1661_v60 = vrot.slane %v1631_v59, 4  ;;  %v1553_v61 = vpop.f32.mrf.mxu0  ;;  %v1582_v62 = vpop.f32.mrf.mxu1  ;;  %v3163_v59 = vld [vmem:[#allocation6 + $0x34] sm:$0xf] }
 0x31a   :  { %v1635_v63 = vpack.c.bf16 %v1582_v62, %v1553_v61 }
 0x31b   :  { %1677 = vst [vmem:[#allocation2 + $0x34] sm:$0xf] %v1661_v60  ;;  %v3179_v27 = vld [vmem:[#allocation2 + $0x50] sm:$0xff]  ;;  %v2861_v60 = vld [vmem:[#allocation6 + $0x3c] sm:$0xf0] }
 0x31c   :  { %v1702_v0 = vrot.slane %v1635_v63, 4  ;;  %v2864_v62 = vor.u32 %v3163_v59, %v2861_v60 }
 0x31d   :  { %v3183_v18 = vld [vmem:[#allocation2 + $0x70] sm:$0xff] }
 0x31e   :  { %1718 = vst [vmem:[#allocation2 + $0x78] sm:$0xf] %v1702_v0  ;;  %v1495_v1 = vpop.f32.mrf.mxu2  ;;  %v1524_v2 = vpop.f32.mrf.mxu3  ;;  %v2843_v0 = vld [vmem:[#allocation6 + $0x8] sm:$0xf] }
 0x31f   :  { %v1634_v3 = vpack.c.bf16 %v1524_v2, %v1495_v1 }
 0x320   :  { %v3171_v31 = vld [vmem:[#allocation2 + $0x10] sm:$0xff] }
 0x321   :  { %v1662_v5 = vrot.slane %v1634_v3, 4  ;;  %v1555_v6 = vpop.f32.mrf.mxu0  ;;  %v1584_v7 = vpop.f32.mrf.mxu1 }
 0x322   :  { %v3303_v8 = vpack.c.bf16 %v1555_v6, %v1553_v61  ;;  %v1638_v9 = vpack.c.bf16 %v1584_v7, %v1555_v6  ;;  %v3175_v20 = vld [vmem:[#allocation2 + $0x30] sm:$0xff] }
 0x323   :  { %1678 = vst [vmem:[#allocation2 + $0x38] sm:$0xf] %v1662_v5  ;;  %v2871_v5 = vld [vmem:[#allocation6 + $0x48] sm:$0xf]  ;;  %v3167_v6 = vld [vmem:[#allocation6 + $0x50] sm:$0xf0] }
 0x324   :  { %3342 = vst [vmem:[#allocation2 + $0x58] sm:$0xff] %v3303_v8   ;;  %v1703_v53 = vrot.slane %v1638_v9, 4  ;;  %v2872_v7 = vor.u32 %v3167_v6, %v2871_v5  ;;  %v3166_v8 = vld [vmem:[#allocation6 + $0x4c] sm:$0xf]  ;;  %v2873_v9 = vld [vmem:[#allocation6 + $0x54] sm:$0xf0] }
 0x325   :  { %v3202_v5 = vld [vmem:[#allocation12 + $0x28] sm:$0xff] }
 0x326   :  { %1719 = vst [vmem:[#allocation2 + $0x7c] sm:$0xf] %v1703_v53  ;;  %v1497_v10 = vpop.f32.mrf.mxu2  ;;  %v1526_v11 = vpop.f32.mrf.mxu3  ;;  %v2876_v53 = vor.u32 %v3166_v8, %v2873_v9 }
 0x327   :  { %v3283_v12 = vpack.c.bf16 %v1497_v10, %v1495_v1  ;;  %v1637_v13 = vpack.c.bf16 %v1526_v11, %v1497_v10  ;;  %v3159_v1 = vld [vmem:[#allocation6 + $0x10] sm:$0xf0]  ;;  %v2855_v10 = vld [vmem:[#allocation6 + $0x20] sm:$0xf]  ;;  %v3162_v11 = vld [vmem:[#allocation6 + $0x28] sm:$0xf0] }
 0x328   :  { %v2844_v3 = vor.u32 %v3159_v1, %v2843_v0  ;;  %v3203_v1 = vld [vmem:[#allocation12 + $0x30] sm:$0xff] }
 0x329   :  { %3338 = vst [vmem:[#allocation2 + $0x18] sm:$0xff] %v3283_v12   ;;  %v1663_v14 = vrot.slane %v1637_v13, 4  ;;  %v2856_v12 = vor.u32 %v3162_v11, %v2855_v10  ;;  %v3196_v13 = vld [vmem:[#allocation11 + $0x38] sm:$0xff]  ;;  %v3201_v10 = vld [vmem:[#allocation12 + $0x20] sm:$0xff] }
 0x32a   :  { %2148 = vmatpush.bf16.msra.mxu2 %v3196_v13 }
 0x32b   :  { %1679 = vst [vmem:[#allocation2 + $0x3c] sm:$0xf] %v1663_v14  ;;  %v3180_v24 = vld [vmem:[#allocation2 + $0x58] sm:$0xff]  ;;  %v3195_v14 = vld [vmem:[#allocation11 + $0x30] sm:$0xff] }
 0x32d   :  { %v3184_v15 = vld [vmem:[#allocation2 + $0x78] sm:$0xff] }
 0x32e   :  { %v1596_v16 = vpop.f32.mrf.mxu2  ;;  %2010 = vmatpush.bf16.msra.mxu0 %v3184_v15  ;;  %2149 = vmatpush.bf16.msra.mxu2 %v3195_v14  ;;  %v3194_v15 = vld [vmem:[#allocation11 + $0x28] sm:$0xff] }
 0x330   :  { %v3172_v28 = vld [vmem:[#allocation2 + $0x18] sm:$0xff] }
 0x332   :  { %v3176_v17 = vld [vmem:[#allocation2 + $0x38] sm:$0xff]  ;;  %2011 = vmatpush.bf16.msra.mxu0 %v3183_v18  ;;  %v3165_v18 = vld [vmem:[#allocation6 + $0x40] sm:$0xf0]  ;;  %2150 = vmatpush.bf16.msra.mxu2 %v3194_v15 }
 0x333   :  { %1981 = vmatpush.bf16.msrb.mxu3 %v3176_v17 }
 0x336   :  { %v1598_v4 = vpop.f32.mrf.mxu2  ;;  %2012 = vmatpush.bf16.msra.mxu0 %v3182_v19  ;;  %v2879_v19 = vld [vmem:[#allocation6 + $0x50] sm:$0xf] }
 0x337   :  { %v3308_v21 = vpack.c.bf16 %v1598_v4, %v1596_v16  ;;  %1982 = vmatpush.bf16.msrb.mxu3 %v3175_v20  ;;  %v2867_v16 = vld [vmem:[#allocation6 + $0x38] sm:$0xf]  ;;  %v3168_v4 = vld [vmem:[#allocation6 + $0x58] sm:$0xf0] }
 0x338   :  { %v2868_v17 = vor.u32 %v3165_v18, %v2867_v16  ;;  %v2880_v20 = vor.u32 %v3168_v4, %v2879_v19 }
 0x339   :  { %3343 = vst [vmem:[#allocation2 + $0x80] sm:$0xff] %v3308_v21   ;;  %v3193_v21 = vld [vmem:[#allocation11 + $0x20] sm:$0xff] }
 0x33a   :  { %2013 = vmatpush.bf16.msra.mxu0 %v3181_v22  ;;  %2151 = vmatpush.bf16.msra.mxu2 %v3193_v21  ;;  %v3192_v22 = vld [vmem:[#allocation11 + $0x18] sm:$0xff] }
 0x33b   :  { %1983 = vmatpush.bf16.msrb.mxu3 %v3174_v23  ;;  %v3191_v23 = vld [vmem:[#allocation11 + $0x10] sm:$0xff] }
 0x33e   :  { %v1601_v25 = vpop.f32.mrf.mxu2  ;;  %2014 = vmatpush.bf16.msra.mxu0 %v3180_v24  ;;  %2152 = vmatpush.bf16.msra.mxu2 %v3192_v22  ;;  %v3190_v24 = vld [vmem:[#allocation11 + $0x8] sm:$0xff] }
 0x33f   :  { %1984 = vmatpush.bf16.msrb.mxu3 %v3173_v26  ;;  %v3189_v26 = vld [vmem:[#allocation11] sm:$0xff] }
 0x340   :  { %v3185_v2 = vld [vmem:[#allocation2 + $0x80] sm:$0xff] }
 0x342   :  { %2015 = vmatpush.bf16.msra.mxu0 %v3179_v27  ;;  %2153 = vmatpush.bf16.msra.mxu2 %v3191_v23 }
 0x343   :  { %1985 = vmatpush.bf16.msrb.mxu3 %v3172_v28 }
 0x346   :  { %v1603_v30 = vpop.f32.mrf.mxu2  ;;  %2016 = vmatpush.bf16.msra.mxu0 %v3178_v29  ;;  %2154 = vmatpush.bf16.msra.mxu2 %v3190_v24 }
 0x347   :  { %v3313_v32 = vpack.c.bf16 %v1603_v30, %v1601_v25  ;;  %1986 = vmatpush.bf16.msrb.mxu3 %v3171_v31  ;;  %v3366_v30 = vld [vmem:[%s3702_s5 + $0x1] ss:$0 sm:$0xff] }
 0x349   :  { %3344 = vst [vmem:[#allocation2 + $0x88] sm:$0xff] %v3313_v32  }
 0x34a   :  { %2017 = vmatpush.bf16.msra.mxu0 %v3177_v33  ;;  %2155 = vmatpush.bf16.msra.mxu2 %v3189_v26 }
 0x34b   :  { %1987 = vmatpush.bf16.msrb.mxu3 %v3170_v34 }
 0x34d   :  { %2018 = vmatmul.bf16.vlgmr.msra.gmra.mxu0 %v2840_v43 }
 0x34e   :  { %v1606_v37 = vpop.f32.mrf.mxu2 }
 0x34f   :  { %1988 = vmatpush.bf16.msrb.mxu3 %v3169_v38 }
 0x350   :  { %v3186_v63 = vld [vmem:[#allocation2 + $0x88] sm:$0xff] }
 0x352   :  { %1989 = vmatmul.bf16.vlgmr.msrb.gmra.mxu3 %v2836_v39 }
 0x356   :  { %v1608_v42 = vpop.f32.mrf.mxu2 }
 0x357   :  { %v3318_v44 = vpack.c.bf16 %v1608_v42, %v1606_v37 }
 0x359   :  { %3345 = vst [vmem:[#allocation2 + $0x90] sm:$0xff] %v3318_v44  }
 0x35d   :  { %2023 = vmatmul.bf16.gmra.mxu0 %v2852_v51 }
 0x35e   :  { %v1611_v47 = vpop.f32.mrf.mxu2 }
 0x360   :  { %v3187_v61 = vld [vmem:[#allocation2 + $0x90] sm:$0xff] }
 0x362   :  { %1994 = vmatmul.bf16.gmra.mxu3 %v2848_v48 }
 0x366   :  { %v1613_v52 = vpop.f32.mrf.mxu2 }
 0x367   :  { %v3323_v54 = vpack.c.bf16 %v1613_v52, %v1611_v47 }
 0x369   :  { %3346 = vst [vmem:[#allocation2 + $0x98] sm:$0xff] %v3323_v54  }
 0x36d   :  { %2028 = vmatmul.bf16.gmra.mxu0 %v2864_v62  ;;  %v3204_v62 = vld [vmem:[#allocation12 + $0x38] sm:$0xff] }
 0x36e   :  { %2257 = vmatpush.bf16.msra.mxu3 %v3204_v62 }
 0x370   :  { %v3188_v58 = vld [vmem:[#allocation2 + $0x98] sm:$0xff] }
 0x371   :  { %2043 = vmatpush.bf16.msra.mxu1 %v3188_v58 }
 0x372   :  { %1999 = vmatmul.bf16.gmra.mxu3 %v2860_v57 }
 0x373   :  { %2258 = vmatpush.bf16.msra.mxu3 %v3203_v1 }
 0x375   :  { %2044 = vmatpush.bf16.msra.mxu1 %v3187_v61 }
 0x377   :  { %2259 = vmatpush.bf16.msra.mxu3 %v3202_v5 }
 0x379   :  { %2045 = vmatpush.bf16.msra.mxu1 %v3186_v63 }
 0x37b   :  { %2260 = vmatpush.bf16.msra.mxu3 %v3201_v10 }
 0x37d   :  { %2046 = vmatpush.bf16.msra.mxu1 %v3185_v2  ;;  %2033 = vmatmul.bf16.gmra.mxu0 %v2876_v53 }
 0x380   :  { %2961 = vmatmul.msk.bf16.vlgmr.msra.gmra.mxu1 %vm1102_vm0, %v2844_v3 }
 0x382   :  { %2004 = vmatmul.bf16.gmra.mxu3 %v2872_v7 }
 0x390   :  { %2962 = vmatmul.msk.bf16.gmra.mxu1 %vm1102_vm0, %v2856_v12 }
 0x3a0   :  { %2963 = vmatmul.msk.bf16.gmra.mxu1 %vm1102_vm0, %v2868_v17 }
 0x3b0   :  { %2964 = vmatmul.msk.bf16.gmra.mxu1 %vm1102_vm0, %v2880_v20 }
 0x3ca   :  { %v2019_v27 = vpop.f32.mrf.mxu0 }
 0x3d2   :  { %v2021_v29 = vpop.f32.mrf.mxu0 }
 0x3d5   :  { %v1990_v25 = vpop.f32.mrf.mxu3 }
 0x3d6   :  { %v1991_v32 = vadd.f32 %v3366_v30, %v1990_v25 }
 0x3d8   :  { %v2020_v35 = vadd.f32 %v2019_v27, %v1991_v32  ;;  %v3200_v27 = vld [vmem:[#allocation12 + $0x18] sm:$0xff] }
 0x3d9   :  { %2261 = vmatpush.bf16.msra.mxu3 %v3200_v27 }
 0x3da   :  { %v2024_v34 = vpop.f32.mrf.mxu0 }
 0x3dd   :  { %v1992_v28 = vpop.f32.mrf.mxu3 }
 0x3de   :  { %v1993_v36 = vadd.f32 %v3366_v30, %v1992_v28  ;;  %v3199_v28 = vld [vmem:[#allocation12 + $0x10] sm:$0xff] }
 0x3df   :  { %2262 = vmatpush.bf16.msra.mxu3 %v3199_v28 }
 0x3e0   :  { %v2022_v38 = vadd.f32 %v2021_v29, %v1993_v36  ;;  %v3198_v29 = vld [vmem:[#allocation12 + $0x8] sm:$0xff] }
 0x3e2   :  { %v2026_v44 = vpop.f32.mrf.mxu0 }
 0x3e3   :  { %2263 = vmatpush.bf16.msra.mxu3 %v3198_v29 }
 0x3e5   :  { %v1995_v31 = vpop.f32.mrf.mxu3 }
 0x3e6   :  { %v1996_v46 = vadd.f32 %v3366_v30, %v1995_v31  ;;  %v3197_v31 = vld [vmem:[#allocation12] sm:$0xff] }
 0x3e7   :  { %2264 = vmatpush.bf16.msra.mxu3 %v3197_v31 }
 0x3e8   :  { %v2025_v49 = vadd.f32 %v2024_v34, %v1996_v46 }
 0x3ea   :  { %v2029_v51 = vpop.f32.mrf.mxu0 }
 0x3ed   :  { %v1997_v40 = vpop.f32.mrf.mxu3 }
 0x3ee   :  { %v1998_v50 = vadd.f32 %v3366_v30, %v1997_v40 }
 0x3f0   :  { %v2027_v54 = vadd.f32 %v2026_v44, %v1998_v50 }
 0x3f2   :  { %v2031_v0 = vpop.f32.mrf.mxu0 }
 0x3f5   :  { %v2000_v48 = vpop.f32.mrf.mxu3 }
 0x3f6   :  { %v2001_v61 = vadd.f32 %v3366_v30, %v2000_v48 }
 0x3f8   :  { %v2030_v2 = vadd.f32 %v2029_v51, %v2001_v61  ;;  %v3368_v61 = vld [vmem:[%s3706_s9] ss:$0 sm:$0xff]  ;;  %s3561_s9 = smov [#allocation14]  }
 0x3f9   :  { %s2298_s11 = sshll.u32 %s3561_s9, 4  ;;  %s2299_s11 = int_to_ptr.vmem [resolvable:$true] %s2298_s11 }
 0x3fa   :  { %v2034_v11 = vpop.f32.mrf.mxu0 }
 0x3fd   :  { %v2048_v33 = vpop.f32.mrf.mxu1  ;;  %v2002_v59 = vpop.f32.mrf.mxu3 }
 0x3fe   :  { %v2049_v37 = vadd.f32 %v2048_v33, %v2020_v35  ;;  %v2003_v3 = vadd.f32 %v3366_v30, %v2002_v59 }
 0x400   :  { %v2068_v42 = vmax.f32 %v2049_v37, 0.0  ;;  %v2032_v8 = vadd.f32 %v2031_v0, %v2003_v3 }
 0x402   :  { %v2036_v4 = vpop.f32.mrf.mxu0 }
 0x405   :  { %v2050_v39 = vpop.f32.mrf.mxu1  ;;  %v2005_v6 = vpop.f32.mrf.mxu3 }
 0x406   :  { %v2051_v41 = vadd.f32 %v2050_v39, %v2022_v38  ;;  %v2006_v15 = vadd.f32 %v3366_v30, %v2005_v6 }
 0x408   :  { %v2069_v43 = vmax.f32 %v2051_v41, 0.0  ;;  %v2035_v17 = vadd.f32 %v2034_v11, %v2006_v15 }
 0x40a   :  { %v2076_v45 = vpack.c.bf16 %v2069_v43, %v2068_v42 }
 0x40c   :  { %2156 = vmatmul.bf16.vlgmr.msra.gmra.mxu2 %v2076_v45 }
 0x40d   :  { %v2053_v47 = vpop.f32.mrf.mxu1  ;;  %v2007_v18 = vpop.f32.mrf.mxu3 }
 0x40e   :  { %v2054_v52 = vadd.f32 %v2053_v47, %v2025_v49  ;;  %v2008_v19 = vadd.f32 %v3366_v30, %v2007_v18  ;;  %v3367_v30 = vld [vmem:[%s3704_s7] ss:$0 sm:$0xff] }
 0x410   :  { %v2070_v57 = vmax.f32 %v2054_v52, 0.0  ;;  %v2037_v21 = vadd.f32 %v2036_v4, %v2008_v19 }
 0x415   :  { %v2055_v55 = vpop.f32.mrf.mxu1 }
 0x416   :  { %v2056_v56 = vadd.f32 %v2055_v55, %v2027_v54 }
 0x418   :  { %v2071_v58 = vmax.f32 %v2056_v56, 0.0 }
 0x41a   :  { %v2077_v60 = vpack.c.bf16 %v2071_v58, %v2070_v57 }
 0x41c   :  { %2161 = vmatmul.bf16.gmra.mxu2 %v2077_v60 }
 0x41d   :  { %v2058_v63 = vpop.f32.mrf.mxu1 }
 0x41e   :  { %v2059_v7 = vadd.f32 %v2058_v63, %v2030_v2 }
 0x420   :  { %v2072_v12 = vmax.f32 %v2059_v7, 0.0 }
 0x425   :  { %v2060_v9 = vpop.f32.mrf.mxu1 }
 0x426   :  { %v2061_v53 = vadd.f32 %v2060_v9, %v2032_v8 }
 0x428   :  { %v2073_v13 = vmax.f32 %v2061_v53, 0.0 }
 0x42a   :  { %v2078_v14 = vpack.c.bf16 %v2073_v13, %v2072_v12 }
 0x42c   :  { %2166 = vmatmul.bf16.gmra.mxu2 %v2078_v14 }
 0x42d   :  { %v2063_v16 = vpop.f32.mrf.mxu1 }
 0x42e   :  { %v2064_v20 = vadd.f32 %v2063_v16, %v2035_v17 }
 0x430   :  { %v2074_v24 = vmax.f32 %v2064_v20, 0.0 }
 0x435   :  { %v2065_v22 = vpop.f32.mrf.mxu1 }
 0x436   :  { %v2066_v23 = vadd.f32 %v2065_v22, %v2037_v21 }
 0x438   :  { %v2075_v25 = vmax.f32 %v2066_v23, 0.0 }
 0x43a   :  { %v2079_v26 = vpack.c.bf16 %v2075_v25, %v2074_v24 }
 0x43c   :  { %2171 = vmatmul.bf16.gmra.mxu2 %v2079_v26 }
 0x48f   :  { %v2157_v32 = vpop.f32.mrf.mxu2 }
 0x490   :  { %v2158_v33 = vadd.f32 %v3367_v30, %v2157_v32 }
 0x492   :  { %v2177_v36 = vmax.f32 %v2158_v33, 0.0 }
 0x497   :  { %v2159_v34 = vpop.f32.mrf.mxu2 }
 0x498   :  { %v2160_v35 = vadd.f32 %v3367_v30, %v2159_v34 }
 0x49a   :  { %v2178_v37 = vmax.f32 %v2160_v35, 0.0 }
 0x49c   :  { %v2185_v38 = vpack.c.bf16 %v2178_v37, %v2177_v36 }
 0x49e   :  { %2265 = vmatmul.bf16.vlgmr.msra.gmra.mxu3 %v2185_v38 }
 0x49f   :  { %v2162_v39 = vpop.f32.mrf.mxu2 }
 0x4a0   :  { %v2163_v40 = vadd.f32 %v3367_v30, %v2162_v39 }
 0x4a2   :  { %v2179_v43 = vmax.f32 %v2163_v40, 0.0 }
 0x4a7   :  { %v2164_v41 = vpop.f32.mrf.mxu2 }
 0x4a8   :  { %v2165_v42 = vadd.f32 %v3367_v30, %v2164_v41 }
 0x4aa   :  { %v2180_v44 = vmax.f32 %v2165_v42, 0.0 }
 0x4ac   :  { %v2186_v45 = vpack.c.bf16 %v2180_v44, %v2179_v43 }
 0x4ae   :  { %2270 = vmatmul.bf16.gmra.mxu3 %v2186_v45 }
 0x4af   :  { %v2167_v46 = vpop.f32.mrf.mxu2 }
 0x4b0   :  { %v2168_v47 = vadd.f32 %v3367_v30, %v2167_v46 }
 0x4b2   :  { %v2181_v50 = vmax.f32 %v2168_v47, 0.0 }
 0x4b7   :  { %v2169_v48 = vpop.f32.mrf.mxu2 }
 0x4b8   :  { %v2170_v49 = vadd.f32 %v3367_v30, %v2169_v48 }
 0x4ba   :  { %v2182_v51 = vmax.f32 %v2170_v49, 0.0 }
 0x4bc   :  { %v2187_v52 = vpack.c.bf16 %v2182_v51, %v2181_v50 }
 0x4be   :  { %2275 = vmatmul.bf16.gmra.mxu3 %v2187_v52 }
 0x4bf   :  { %v2172_v54 = vpop.f32.mrf.mxu2 }
 0x4c0   :  { %v2173_v55 = vadd.f32 %v3367_v30, %v2172_v54 }
 0x4c2   :  { %v2183_v58 = vmax.f32 %v2173_v55, 0.0 }
 0x4c7   :  { %v2174_v56 = vpop.f32.mrf.mxu2 }
 0x4c8   :  { %v2175_v57 = vadd.f32 %v3367_v30, %v2174_v56 }
 0x4ca   :  { %v2184_v59 = vmax.f32 %v2175_v57, 0.0 }
 0x4cc   :  { %v2188_v60 = vpack.c.bf16 %v2184_v59, %v2183_v58 }
 0x4ce   :  { %2280 = vmatmul.bf16.gmra.mxu3 %v2188_v60 }
 0x521   :  { %v2266_v62 = vpop.f32.mrf.mxu3 }
 0x522   :  { %v2267_v63 = vadd.f32 %v3368_v61, %v2266_v62 }
 0x524   :  { %2286 = vst [vmem:[#allocation14] sm:$0xff] %v2267_v63 }
 0x529   :  { %v2268_v0 = vpop.f32.mrf.mxu3 }
 0x52a   :  { %v2269_v1 = vadd.f32 %v3368_v61, %v2268_v0 }
 0x52c   :  { %2287 = vst [vmem:[#allocation14 + $0x8] sm:$0xff] %v2269_v1 }
 0x531   :  { %v2271_v2 = vpop.f32.mrf.mxu3 }
 0x532   :  { %v2272_v3 = vadd.f32 %v3368_v61, %v2271_v2 }
 0x534   :  { %2288 = vst [vmem:[#allocation14 + $0x10] sm:$0xff] %v2272_v3 }
 0x539   :  { %v2273_v5 = vpop.f32.mrf.mxu3 }
 0x53a   :  { %v2274_v6 = vadd.f32 %v3368_v61, %v2273_v5 }
 0x53c   :  { %2289 = vst [vmem:[#allocation14 + $0x18] sm:$0xff] %v2274_v6 }
 0x541   :  { %v2276_v7 = vpop.f32.mrf.mxu3 }
 0x542   :  { %v2277_v8 = vadd.f32 %v3368_v61, %v2276_v7 }
 0x544   :  { %2290 = vst [vmem:[#allocation14 + $0x20] sm:$0xff] %v2277_v8 }
 0x549   :  { %v2278_v9 = vpop.f32.mrf.mxu3 }
 0x54a   :  { %v2279_v53 = vadd.f32 %v3368_v61, %v2278_v9 }
 0x54c   :  { %2291 = vst [vmem:[#allocation14 + $0x28] sm:$0xff] %v2279_v53 }
 0x551   :  { %v2281_v10 = vpop.f32.mrf.mxu3 }
 0x552   :  { %v2282_v11 = vadd.f32 %v3368_v61, %v2281_v10 }
 0x554   :  { %2292 = vst [vmem:[#allocation14 + $0x30] sm:$0xff] %v2282_v11 }
 0x559   :  { %v2283_v12 = vpop.f32.mrf.mxu3 }
 0x55a   :  { %v2284_v13 = vadd.f32 %v3368_v61, %v2283_v12 }
 0x55c   :  { %2293 = vst [vmem:[#allocation14 + $0x38] sm:$0xff] %v2284_v13 }
 0x55d   :  { %2306 = dma.vmem_to_hbm [thread:$0]  %s2299_s11, 1024, %s2301_s13, [#allocation5], %s3562_s14, %s3562_s14, %s3563_s15  }
 0x55e   :  { %3545 = dma.done.wait [#allocation5], 1024  }
 0x55f   :  { %3546 = vsyncadd [#allocation5], 4294966272 }
 0x560   :  { %2311 = vsyncpa [#allocation4], 1 }
 0x561   :  { %2312 = vsyncpa [#allocation7], 1 }
 0x562   :  { %2313 = vsyncpa [#allocation10], 1 }
 0x563   :  { %2314 = vsyncpa [#allocation13], 1 }
 0x564   :  { %2315 = vsyncpa [#allocation5], 1 }

</bundles_post_ra>
